<compile_context>
chip_gen: v6e
topology: v6e:2x2x1
jax: 0.10.0
libtpu: 0.0.40
codegen_flags: <defaults>
</compile_context>

<pallas_src>
import jax
import jax.numpy as jnp
from jax.experimental import pallas as pl
from jax.experimental.pallas import tpu as pltpu

IN_DIM = 768        # hard-coded in the module (nn.Linear(768, hidden_size))
HIDDEN = 1024       # hidden_size default
NUM_LABELS = 2      # num_labels default


def _round_up(x, m):
    return (x + m - 1) // m * m


def _cls_head_kernel(x_ref, w1_ref, b1_ref, w2_ref, b2_ref, o_ref):
    # x_ref:  (TB, IN_DIM)          bf16
    # w1_ref: (IN_DIM, HIDDEN)      bf16    b1_ref: (1, HIDDEN)      f32
    # w2_ref: (HIDDEN, NUM_LABELS)  bf16    b2_ref: (1, NUM_LABELS)  f32
    # o_ref:  (TB, NUM_LABELS)      f32
    h = jnp.dot(x_ref[...], w1_ref[...], preferred_element_type=jnp.float32)
    h = jnp.maximum(h + b1_ref[...], 0.0)                  # f32 bias + ReLU
    out = jnp.dot(h.astype(jnp.bfloat16), w2_ref[...],
                  preferred_element_type=jnp.float32)
    o_ref[...] = (out + b2_ref[...]).astype(o_ref.dtype)


def gpt2_classification_head(features, w1, b1, w2, b2, *, tb=None):
    """features: [B, IN_DIM] f32.  w1: [IN_DIM, H], b1: [H], w2: [H, L], b2: [L].

    Returns logits [B, L] f32. Weights/activations are cast to bf16 for the
    MXU; accumulation and the bias/ReLU epilogue are f32.
    """
    B, in_dim = features.shape
    assert in_dim == IN_DIM
    hidden = w1.shape[1]
    num_labels = w2.shape[1]

    if tb is None:
        # 256 fills the MXU rows on v6e/v7x (and is a multiple of 128 for
        # v5e); for small batches just run the whole (padded) batch at once.
        tb = 256 if B >= 256 else _round_up(B, 8)

    b_pad = _round_up(B, tb)
    x = features
    if b_pad != B:
        x = jnp.pad(x, ((0, b_pad - B), (0, 0)))

    # bf16 MXU operands, f32 biases for the f32 epilogue.
    x_bf = x.astype(jnp.bfloat16)
    w1_bf = w1.astype(jnp.bfloat16)
    w2_bf = w2.astype(jnp.bfloat16)
    b1_2d = b1.reshape(1, hidden).astype(jnp.float32)
    b2_2d = b2.reshape(1, num_labels).astype(jnp.float32)

    grid = (b_pad // tb,)

    flops = 2 * b_pad * (in_dim * hidden + hidden * num_labels)
    bytes_accessed = (
        x_bf.size * 2 + w1_bf.size * 2 + w2_bf.size * 2
        + b1_2d.size * 4 + b2_2d.size * 4
        + b_pad * num_labels * 4
    )

    out = pl.pallas_call(
        _cls_head_kernel,
        out_shape=jax.ShapeDtypeStruct((b_pad, num_labels), jnp.float32),
        grid_spec=pl.GridSpec(
            grid=grid,
            in_specs=[
                pl.BlockSpec((tb, in_dim), lambda i: (i, 0)),           # x tile
                pl.BlockSpec((in_dim, hidden), lambda i: (0, 0)),       # W1 (resident)
                pl.BlockSpec((1, hidden), lambda i: (0, 0)),            # b1
                pl.BlockSpec((hidden, num_labels), lambda i: (0, 0)),   # W2
                pl.BlockSpec((1, num_labels), lambda i: (0, 0)),        # b2
            ],
            out_specs=pl.BlockSpec((tb, num_labels), lambda i: (i, 0)),
        ),
        compiler_params=pltpu.CompilerParams(
            dimension_semantics=("parallel",),
        ),
        cost_estimate=pl.CostEstimate(
            flops=flops, transcendentals=0, bytes_accessed=bytes_accessed),
    )(x_bf, w1_bf, b1_2d, w2_bf, b2_2d)

    return out[:B]


if __name__ == "__main__":
    key = jax.random.PRNGKey(0)
    k_x, k_w1, k_b1, k_w2, k_b2 = jax.random.split(key, 5)

    B = 4  # small batch; exercises the pad-to-tile + slice-back path

    # Deterministic synthetic parameters (uniform, roughly nn.Linear's scale).
    bound1 = 1.0 / (IN_DIM ** 0.5)
    bound2 = 1.0 / (HIDDEN ** 0.5)
    w1 = jax.random.uniform(k_w1, (IN_DIM, HIDDEN), jnp.float32, -bound1, bound1)
    b1 = jax.random.uniform(k_b1, (HIDDEN,), jnp.float32, -bound1, bound1)
    w2 = jax.random.uniform(k_w2, (HIDDEN, NUM_LABELS), jnp.float32, -bound2, bound2)
    b2 = jax.random.uniform(k_b2, (NUM_LABELS,), jnp.float32, -bound2, bound2)

    features = jax.random.normal(k_x, (B, IN_DIM), jnp.float32)

    logits = gpt2_classification_head(features, w1, b1, w2, b2)
    logits = jax.block_until_ready(logits)
    assert logits.shape == (B, NUM_LABELS)

    # Reference 1: same bf16-operand / f32-accumulate path in plain JAX (tight).
    h_ref = jnp.maximum(
        jnp.dot(features.astype(jnp.bfloat16), w1.astype(jnp.bfloat16),
                preferred_element_type=jnp.float32) + b1, 0.0)
    ref_bf16 = jnp.dot(h_ref.astype(jnp.bfloat16), w2.astype(jnp.bfloat16),
                       preferred_element_type=jnp.float32) + b2
    assert jnp.allclose(logits, ref_bf16, atol=1e-3, rtol=1e-3)

    # Reference 2: full f32 math (loose tolerance for bf16 matmul operands).
    ref_f32 = jnp.maximum(features @ w1 + b1, 0.0) @ w2 + b2
    assert jnp.allclose(logits, ref_f32, atol=5e-2, rtol=5e-2)

    print("KERNEL_OK")
</pallas_src>

<mosaic_0001>
module attributes {stable_mosaic.version = 11 : i64} {
  func.func @_cls_head_kernel(%arg0: i32, %arg1: memref<8x768xbf16, #tpu.memory_space<vmem>>, %arg2: memref<768x1024xbf16, #tpu.memory_space<vmem>>, %arg3: memref<1x1024xf32, #tpu.memory_space<vmem>>, %arg4: memref<1024x2xbf16, #tpu.memory_space<vmem>>, %arg5: memref<1x2xf32, #tpu.memory_space<vmem>>, %arg6: memref<8x2xf32, #tpu.memory_space<vmem>>) attributes {dimension_semantics = [#tpu.dimension_semantics<parallel>], iteration_bounds = array<i64: 1>, scalar_prefetch = 0 : i64, scratch_operands = 0 : i64, tpu.core_type = #tpu.core_type<tc>, window_params = [{transform_indices = @transform_0, window_bounds = array<i64: 8, 768>}, {pipeline_mode = #tpu.pipeline_mode<synchronous>, transform_indices = @transform_1, window_bounds = array<i64: 768, 1024>}, {pipeline_mode = #tpu.pipeline_mode<synchronous>, transform_indices = @transform_2, window_bounds = array<i64: 1, 1024>}, {pipeline_mode = #tpu.pipeline_mode<synchronous>, transform_indices = @transform_3, window_bounds = array<i64: 1024, 2>}, {pipeline_mode = #tpu.pipeline_mode<synchronous>, transform_indices = @transform_4, window_bounds = array<i64: 1, 2>}, {transform_indices = @transform_5, window_bounds = array<i64: 8, 2>}]} {
    %c0 = arith.constant 0 : index
    %c0_0 = arith.constant 0 : index
    %0 = vector.load %arg1[%c0, %c0_0] : memref<8x768xbf16, #tpu.memory_space<vmem>>, vector<8x768xbf16>
    %c0_1 = arith.constant 0 : index
    %c0_2 = arith.constant 0 : index
    %1 = vector.load %arg2[%c0_1, %c0_2] : memref<768x1024xbf16, #tpu.memory_space<vmem>>, vector<768x1024xbf16>
    %cst = arith.constant dense<0.000000e+00> : vector<8x1024xf32>
    %2 = tpu.matmul %0, %1, %cst {dimension_numbers = #tpu.dot_dimension_numbers<[1], [0], [0], [1], [0, 0, 1, 1], [], []>} : vector<8x768xbf16>, vector<768x1024xbf16>, vector<8x1024xf32> -> vector<8x1024xf32>
    %c0_3 = arith.constant 0 : index
    %c0_4 = arith.constant 0 : index
    %3 = vector.load %arg3[%c0_3, %c0_4] : memref<1x1024xf32, #tpu.memory_space<vmem>>, vector<1x1024xf32>
    %4 = vector.broadcast %3 : vector<1x1024xf32> to vector<8x1024xf32>
    %5 = arith.addf %2, %4 : vector<8x1024xf32>
    %cst_5 = arith.constant 0.000000e+00 : f32
    %6 = vector.broadcast %cst_5 : f32 to vector<8x1024xf32>
    %7 = arith.maximumf %5, %6 : vector<8x1024xf32>
    %8 = arith.truncf %7 : vector<8x1024xf32> to vector<8x1024xbf16>
    %c0_6 = arith.constant 0 : index
    %c0_7 = arith.constant 0 : index
    %9 = vector.load %arg4[%c0_6, %c0_7] : memref<1024x2xbf16, #tpu.memory_space<vmem>>, vector<1024x2xbf16>
    %cst_8 = arith.constant dense<0.000000e+00> : vector<8x2xf32>
    %10 = tpu.matmul %8, %9, %cst_8 {dimension_numbers = #tpu.dot_dimension_numbers<[1], [0], [0], [1], [0, 0, 1, 1], [], []>} : vector<8x1024xbf16>, vector<1024x2xbf16>, vector<8x2xf32> -> vector<8x2xf32>
    %c0_9 = arith.constant 0 : index
    %c0_10 = arith.constant 0 : index
    %11 = vector.load %arg5[%c0_9, %c0_10] : memref<1x2xf32, #tpu.memory_space<vmem>>, vector<1x2xf32>
    %12 = vector.broadcast %11 : vector<1x2xf32> to vector<8x2xf32>
    %13 = arith.addf %10, %12 : vector<8x2xf32>
    %c0_11 = arith.constant 0 : index
    %c0_12 = arith.constant 0 : index
    %14 = vector.load %arg6[%c0_11, %c0_12] : memref<8x2xf32, #tpu.memory_space<vmem>>, vector<8x2xf32>
    tpu.vector_store %arg6[%c0_11, %c0_12], %13 {strides = array<i32>} : memref<8x2xf32, #tpu.memory_space<vmem>>, vector<8x2xf32>,
    return
  }
  func.func @transform_0(%arg0: i32) -> (i32, i32) {
    %c0_i32 = arith.constant 0 : i32
    %c0_i32_0 = arith.constant 0 : i32
    return %arg0, %c0_i32 : i32, i32
  }
  func.func @transform_1(%arg0: i32) -> (i32, i32) {
    %c0_i32 = arith.constant 0 : i32
    %c0_i32_0 = arith.constant 0 : i32
    %c0_i32_1 = arith.constant 0 : i32
    return %c0_i32, %c0_i32_0 : i32, i32
  }
  func.func @transform_2(%arg0: i32) -> (i32, i32) {
    %c0_i32 = arith.constant 0 : i32
    %c0_i32_0 = arith.constant 0 : i32
    %c0_i32_1 = arith.constant 0 : i32
    return %c0_i32, %c0_i32_0 : i32, i32
  }
  func.func @transform_3(%arg0: i32) -> (i32, i32) {
    %c0_i32 = arith.constant 0 : i32
    %c0_i32_0 = arith.constant 0 : i32
    %c0_i32_1 = arith.constant 0 : i32
    return %c0_i32, %c0_i32_0 : i32, i32
  }
  func.func @transform_4(%arg0: i32) -> (i32, i32) {
    %c0_i32 = arith.constant 0 : i32
    %c0_i32_0 = arith.constant 0 : i32
    %c0_i32_1 = arith.constant 0 : i32
    return %c0_i32, %c0_i32_0 : i32, i32
  }
  func.func @transform_5(%arg0: i32) -> (i32, i32) {
    %c0_i32 = arith.constant 0 : i32
    %c0_i32_0 = arith.constant 0 : i32
    return %arg0, %c0_i32 : i32, i32
  }
}

</mosaic_0001>

<bundles_post_ra>
// kernel: tpu_custom_call.1
= control target key start
LH: loop header
LB: loop body
LE: loop exit
PB: predicated region body
PF: predicated region fallthrough
CT: control target
= control target key end

     0   :  { %10 = vsyncpa [#allocation3], 0  ;;  %s4676_s0 = inlined_call_operand.hbm [shape: bf16[8,768], index: 0, kind: input, shape index: {}]   ;;  %s4677_s1 = inlined_call_operand.hbm [shape: bf16[768,1024], index: 1, kind: input, shape index: {}]   ;;  %s4678_s2 = inlined_call_operand.hbm [shape: f32[1,1024], index: 2, kind: input, shape index: {}]   ;;  %s4679_s3 = inlined_call_operand.vmem [shape: bf16[1024,2], index: 3, kind: input, shape index: {}]   ;;  %s4680_s4 = inlined_call_operand.hbm [shape: f32[1,2], index: 4, kind: input, shape index: {}]   ;;  %s4681_s5 = inlined_call_operand.vmem [shape: f32[8,2], index: 5, kind: output, shape index: {}]  }
   0x1   :  { %11 = vsyncpa [#allocation5], 0 }
   0x2   :  { %12 = vsyncpa [#allocation8], 0  ;;  %s4342_s18 = smov [#allocation4]  }
   0x3   :  { %s28_s19 = sshll.u32 %s4342_s18, 4  ;;  %s29_s19 = int_to_ptr.vmem [resolvable:$true] %s28_s19 }
   0x4   :  { %s4264_s20 = scalar_lea.vmem %s29_s19, 49152  ;;  %p4269_p1 = scmp.lt.s32.totalorder %s29_s19, %s29_s19 }
   0x5   :  { %p4265_p0 = scmp.ne.s32.totalorder %s29_s19, %s4264_s20  ;;  %p4270_p2 = scmp.lt.s32.totalorder %s4264_s20, %s4264_s20 }
   0x7   :  { %p4271_p3 = por %p4270_p2, %p4269_p1 }
   0x9   :  { %p4272_p4 = pnand %p4271_p3, %p4265_p0 }
   0xb   :  { %4275 = shalt.err (!%p4272_p4)
}
   0xc   :  { %s4343_s21 = smov 512   ;;  %s4344_s22 = smov 32  }
   0xd   :  { %34 = dma.hbm_to_vmem [thread:$0]  %s4677_s1, 49152, %s29_s19, [#allocation5], %s4343_s21, %s4343_s21, %s4344_s22  }
   0xe   :  { %s4345_s25 = smov [#allocation2]   ;;  %s4346_s27 = smov [#allocation6]  }
   0xf   :  { %s19_s26 = sshll.u32 %s4345_s25, 4  ;;  %s41_s28 = sshll.u32 %s4346_s27, 4  ;;  %s20_s26 = int_to_ptr.vmem [resolvable:$true] %s19_s26  ;;  %s42_s28 = int_to_ptr.vmem [resolvable:$true] %s41_s28 }
  0x10   :  { %s4284_s29 = scalar_lea.vmem %s20_s26, 384  ;;  %p4289_p6 = scmp.lt.s32.totalorder %s20_s26, %s20_s26 }
  0x11   :  { %p4285_p5 = scmp.ne.s32.totalorder %s20_s26, %s4284_s29  ;;  %p4290_p7 = scmp.lt.s32.totalorder %s4284_s29, %s4284_s29 }
  0x13   :  { %p4291_p8 = por %p4290_p7, %p4289_p6 }
  0x15   :  { %p4292_p9 = pnand %p4291_p8, %p4285_p5 }
  0x17   :  { %4295 = shalt.err (!%p4292_p9)
}
  0x18   :  { %22 = dma.hbm_to_vmem [thread:$0]  %s4676_s0, 384, %s20_s26, [#allocation3]  }
  0x19   :  { %s4304_s7 = scalar_lea.vmem %s42_s28, 128  ;;  %p4309_p11 = scmp.lt.s32.totalorder %s42_s28, %s42_s28 }
  0x1a   :  { %p4305_p10 = scmp.ne.s32.totalorder %s42_s28, %s4304_s7  ;;  %p4310_p12 = scmp.lt.s32.totalorder %s4304_s7, %s4304_s7 }
  0x1c   :  { %p4311_p13 = por %p4310_p12, %p4309_p11 }
  0x1e   :  { %p4312_p0 = pnand %p4311_p13, %p4305_p10 }
  0x20   :  { %4315 = shalt.err (!%p4312_p0)
}
  0x21   :  { %44 = dma.hbm_to_vmem [thread:$0]  %s4678_s2, 128, %s42_s28, [#allocation5]  }
  0x22   :  { %s4347_s9 = smov [#allocation7]  }
  0x23   :  { %s53_s10 = sshll.u32 %s4347_s9, 4  ;;  %s54_s10 = int_to_ptr.vmem [resolvable:$true] %s53_s10 }
  0x24   :  { %s4324_s11 = scalar_lea.vmem %s54_s10, 16  ;;  %s4328_s12 = scalar_lea.vmem %s54_s10, 32 }
  0x25   :  { %p4325_p1 = scmp.ne.s32.totalorder %s54_s10, %s4324_s11  ;;  %p4329_p2 = scmp.lt.s32.totalorder %s54_s10, %s54_s10 }
  0x26   :  { %p4330_p3 = scmp.lt.s32.totalorder %s4328_s12, %s4324_s11 }
  0x28   :  { %p4331_p4 = por %p4330_p3, %p4329_p2 }
  0x2a   :  { %p4332_p5 = pnand %p4331_p4, %p4325_p1 }
  0x2c   :  { %4335 = shalt.err (!%p4332_p5)
}
  0x2d   :  { %56 = dma.hbm_to_vmem [thread:$0]  %s4680_s4, 16, %s54_s10, [#allocation8]  }
  0x2e   :  { %4336 = dma.done.wait [#allocation3], 384  }
  0x2f   :  { %4337 = vsyncadd [#allocation3], 4294966912 }
  0x30   :  { %4338 = dma.done.wait [#allocation5], 49280  }
  0x31   :  { %4339 = vsyncadd [#allocation5], 4294918016 }
  0x32   :  { %4340 = dma.done.wait [#allocation8], 16  }
  0x33   :  { %4341 = vsyncadd [#allocation8], 4294967280  ;;  %v129_v0 = vld [vmem:[#allocation4 + $0x1c0] sm:$0xff]  ;;  %v4390_v53 = vld [vmem:[#allocation2] sm:$0xff]  ;;  %vm3627_vm0 = vcmask 15360  }
  0x34   :  { %v133_v1 = vld [vmem:[#allocation4 + $0x1e0] sm:$0xff]  ;;  %v4392_v54 = vld [vmem:[#allocation2 + $0x8] sm:$0xff]  ;;  %v4396_v58 = vcombine.high %v4390_v53, %v4390_v53 }
  0x35   :  { %v257_v2 = vld [vmem:[#allocation4 + $0x5c0] sm:$0xff]  ;;  %v3699_v3 = vcombine.high %v129_v0, %v133_v1  ;;  %v3698_v5 = vcombine.low %v129_v0, %v133_v1  ;;  %v4400_v59 = vcombine.high %v4392_v54, %v4392_v54 }
  0x36   :  { %v261_v4 = vld [vmem:[#allocation4 + $0x5e0] sm:$0xff]  ;;  %2472 = vmatprep.mubr.bf16.mxu0 %v4396_v58 }
  0x37   :  { %v121_v6 = vld [vmem:[#allocation4 + $0x180] sm:$0xff]  ;;  %v3827_v8 = vcombine.high %v257_v2, %v261_v4  ;;  %v3826_v9 = vcombine.low %v257_v2, %v261_v4  ;;  %2440 = vmatprep.subr.bf16.mxu0 %v3699_v3  ;;  %2513 = vmatprep.mubr.bf16.mxu1 %v4400_v59 }
  0x38   :  { %v125_v7 = vld [vmem:[#allocation4 + $0x1a0] sm:$0xff]  ;;  %2441 = vmatpush1.bf16.msra.mxu0 %v3698_v5 }
  0x39   :  { %v3691_v10 = vcombine.high %v121_v6, %v125_v7  ;;  %v249_v11 = vld [vmem:[#allocation4 + $0x580] sm:$0xff]  ;;  %2481 = vmatprep.subr.bf16.mxu1 %v3827_v8  ;;  %v3690_v18 = vcombine.low %v121_v6, %v125_v7 }
  0x3a   :  { %v253_v12 = vld [vmem:[#allocation4 + $0x5a0] sm:$0xff]  ;;  %2482 = vmatpush1.bf16.msra.mxu1 %v3826_v9 }
  0x3b   :  { %v113_v13 = vld [vmem:[#allocation4 + $0x140] sm:$0xff]  ;;  %v3819_v14 = vcombine.high %v249_v11, %v253_v12  ;;  %2442 = vmatprep.subr.bf16.mxu0 %v3691_v10  ;;  %v3818_v19 = vcombine.low %v249_v11, %v253_v12 }
  0x3c   :  { %v117_v15 = vld [vmem:[#allocation4 + $0x160] sm:$0xff]  ;;  %2443 = vmatpush1.bf16.msra.mxu0 %v3690_v18 }
  0x3d   :  { %v241_v16 = vld [vmem:[#allocation4 + $0x540] sm:$0xff]  ;;  %v3683_v20 = vcombine.high %v113_v13, %v117_v15  ;;  %2483 = vmatprep.subr.bf16.mxu1 %v3819_v14  ;;  %v3682_v26 = vcombine.low %v113_v13, %v117_v15 }
  0x3e   :  { %v245_v17 = vld [vmem:[#allocation4 + $0x560] sm:$0xff]  ;;  %2484 = vmatpush1.bf16.msra.mxu1 %v3818_v19 }
  0x3f   :  { %v3811_v21 = vcombine.high %v241_v16, %v245_v17  ;;  %v105_v22 = vld [vmem:[#allocation4 + $0x100] sm:$0xff]  ;;  %2444 = vmatprep.subr.bf16.mxu0 %v3683_v20  ;;  %v3810_v27 = vcombine.low %v241_v16, %v245_v17 }
  0x40   :  { %v109_v23 = vld [vmem:[#allocation4 + $0x120] sm:$0xff]  ;;  %2445 = vmatpush1.bf16.msra.mxu0 %v3682_v26 }
  0x41   :  { %v233_v24 = vld [vmem:[#allocation4 + $0x500] sm:$0xff]  ;;  %v3675_v28 = vcombine.high %v105_v22, %v109_v23  ;;  %2485 = vmatprep.subr.bf16.mxu1 %v3811_v21  ;;  %v3674_v34 = vcombine.low %v105_v22, %v109_v23 }
  0x42   :  { %v237_v25 = vld [vmem:[#allocation4 + $0x520] sm:$0xff]  ;;  %2486 = vmatpush1.bf16.msra.mxu1 %v3810_v27 }
  0x43   :  { %v3803_v29 = vcombine.high %v233_v24, %v237_v25  ;;  %v97_v30 = vld [vmem:[#allocation4 + $0xc0] sm:$0xff]  ;;  %2446 = vmatprep.subr.bf16.mxu0 %v3675_v28  ;;  %v3802_v35 = vcombine.low %v233_v24, %v237_v25 }
  0x44   :  { %v101_v31 = vld [vmem:[#allocation4 + $0xe0] sm:$0xff]  ;;  %2447 = vmatpush1.bf16.msra.mxu0 %v3674_v34 }
  0x45   :  { %v225_v32 = vld [vmem:[#allocation4 + $0x4c0] sm:$0xff]  ;;  %v3667_v36 = vcombine.high %v97_v30, %v101_v31  ;;  %2487 = vmatprep.subr.bf16.mxu1 %v3803_v29  ;;  %v3666_v42 = vcombine.low %v97_v30, %v101_v31 }
  0x46   :  { %v229_v33 = vld [vmem:[#allocation4 + $0x4e0] sm:$0xff]  ;;  %2488 = vmatpush1.bf16.msra.mxu1 %v3802_v35 }
  0x47   :  { %v3795_v37 = vcombine.high %v225_v32, %v229_v33  ;;  %v89_v38 = vld [vmem:[#allocation4 + $0x80] sm:$0xff]  ;;  %2448 = vmatprep.subr.bf16.mxu0 %v3667_v36  ;;  %v3794_v43 = vcombine.low %v225_v32, %v229_v33 }
  0x48   :  { %v93_v39 = vld [vmem:[#allocation4 + $0xa0] sm:$0xff]  ;;  %2449 = vmatpush1.bf16.msra.mxu0 %v3666_v42 }
  0x49   :  { %v217_v40 = vld [vmem:[#allocation4 + $0x480] sm:$0xff]  ;;  %v3659_v44 = vcombine.high %v89_v38, %v93_v39  ;;  %2489 = vmatprep.subr.bf16.mxu1 %v3795_v37  ;;  %v3658_v50 = vcombine.low %v89_v38, %v93_v39 }
  0x4a   :  { %v221_v41 = vld [vmem:[#allocation4 + $0x4a0] sm:$0xff]  ;;  %2490 = vmatpush1.bf16.msra.mxu1 %v3794_v43 }
  0x4b   :  { %v3787_v45 = vcombine.high %v217_v40, %v221_v41  ;;  %v81_v46 = vld [vmem:[#allocation4 + $0x40] sm:$0xff]  ;;  %2450 = vmatprep.subr.bf16.mxu0 %v3659_v44  ;;  %v3786_v51 = vcombine.low %v217_v40, %v221_v41 }
  0x4c   :  { %v85_v47 = vld [vmem:[#allocation4 + $0x60] sm:$0xff]  ;;  %2451 = vmatpush1.bf16.msra.mxu0 %v3658_v50 }
  0x4d   :  { %v209_v48 = vld [vmem:[#allocation4 + $0x440] sm:$0xff]  ;;  %v3651_v52 = vcombine.high %v81_v46, %v85_v47  ;;  %2491 = vmatprep.subr.bf16.mxu1 %v3787_v45  ;;  %v3650_v62 = vcombine.low %v81_v46, %v85_v47 }
  0x4e   :  { %v213_v49 = vld [vmem:[#allocation4 + $0x460] sm:$0xff]  ;;  %2492 = vmatpush1.bf16.msra.mxu1 %v3786_v51 }
  0x4f   :  { %v3779_v55 = vcombine.high %v209_v48, %v213_v49  ;;  %v73_v56 = vld [vmem:[#allocation4] sm:$0xff]  ;;  %2452 = vmatprep.subr.bf16.mxu0 %v3651_v52  ;;  %v3778_v63 = vcombine.low %v209_v48, %v213_v49 }
  0x50   :  { %v77_v57 = vld [vmem:[#allocation4 + $0x20] sm:$0xff]  ;;  %2453 = vmatpush1.bf16.msra.mxu0 %v3650_v62 }
  0x51   :  { %v201_v60 = vld [vmem:[#allocation4 + $0x400] sm:$0xff]  ;;  %v3643_v0 = vcombine.high %v73_v56, %v77_v57  ;;  %2493 = vmatprep.subr.bf16.mxu1 %v3779_v55  ;;  %v3642_v6 = vcombine.low %v73_v56, %v77_v57 }
  0x52   :  { %v205_v61 = vld [vmem:[#allocation4 + $0x420] sm:$0xff]  ;;  %2494 = vmatpush1.bf16.msra.mxu1 %v3778_v63 }
  0x53   :  { %v3771_v1 = vcombine.high %v201_v60, %v205_v61  ;;  %v193_v2 = vld [vmem:[#allocation4 + $0x3c0] sm:$0xff]  ;;  %2454 = vmatprep.subr.bf16.mxu0 %v3643_v0  ;;  %v3770_v7 = vcombine.low %v201_v60, %v205_v61 }
  0x54   :  { %v197_v3 = vld [vmem:[#allocation4 + $0x3e0] sm:$0xff]  ;;  %2455 = vmatpush1.bf16.msra.mxu0 %v3642_v6 }
  0x55   :  { %v321_v4 = vld [vmem:[#allocation4 + $0x7c0] sm:$0xff]  ;;  %v3763_v8 = vcombine.high %v193_v2, %v197_v3  ;;  %2495 = vmatprep.subr.bf16.mxu1 %v3771_v1  ;;  %v3762_v14 = vcombine.low %v193_v2, %v197_v3 }
  0x56   :  { %v325_v5 = vld [vmem:[#allocation4 + $0x7e0] sm:$0xff]  ;;  %2496 = vmatpush1.bf16.msra.mxu1 %v3770_v7 }
  0x57   :  { %v3891_v9 = vcombine.high %v321_v4, %v325_v5  ;;  %v185_v10 = vld [vmem:[#allocation4 + $0x380] sm:$0xff]  ;;  %2456 = vmatprep.subr.bf16.mxu0 %v3763_v8  ;;  %v3890_v15 = vcombine.low %v321_v4, %v325_v5  ;;  %v130_v8 = vld [vmem:[#allocation4 + $0x1c8] sm:$0xff] }
  0x58   :  { %v189_v11 = vld [vmem:[#allocation4 + $0x3a0] sm:$0xff]  ;;  %2457 = vmatpush2.bf16.msra.mxu0 %v3762_v14 }
  0x59   :  { %v313_v12 = vld [vmem:[#allocation4 + $0x780] sm:$0xff]  ;;  %v3755_v16 = vcombine.high %v185_v10, %v189_v11  ;;  %2497 = vmatprep.subr.bf16.mxu1 %v3891_v9  ;;  %v3754_v22 = vcombine.low %v185_v10, %v189_v11  ;;  %v134_v9 = vld [vmem:[#allocation4 + $0x1e8] sm:$0xff] }
  0x5a   :  { %v317_v13 = vld [vmem:[#allocation4 + $0x7a0] sm:$0xff]  ;;  %2498 = vmatpush2.bf16.msra.mxu1 %v3890_v15 }
  0x5b   :  { %v3883_v17 = vcombine.high %v313_v12, %v317_v13  ;;  %v177_v18 = vld [vmem:[#allocation4 + $0x340] sm:$0xff]  ;;  %2458 = vmatprep.subr.bf16.mxu0 %v3755_v16  ;;  %v3882_v23 = vcombine.low %v313_v12, %v317_v13  ;;  %v3701_v13 = vcombine.high %v130_v8, %v134_v9  ;;  %v4406_v16 = vcombine.low %v4390_v53, %v4390_v53 }
  0x5c   :  { %v181_v19 = vld [vmem:[#allocation4 + $0x360] sm:$0xff]  ;;  %2459 = vmatpush2.bf16.msra.mxu0 %v3754_v22  ;;  %v3700_v22 = vcombine.low %v130_v8, %v134_v9 }
  0x5d   :  { %v305_v20 = vld [vmem:[#allocation4 + $0x740] sm:$0xff]  ;;  %v3747_v24 = vcombine.high %v177_v18, %v181_v19  ;;  %2499 = vmatprep.subr.bf16.mxu1 %v3883_v17  ;;  %v3746_v30 = vcombine.low %v177_v18, %v181_v19  ;;  %v122_v17 = vld [vmem:[#allocation4 + $0x188] sm:$0xff]  ;;  %v4408_v19 = vld [vmem:[#allocation2 + $0x10] sm:$0xff] }
  0x5e   :  { %v309_v21 = vld [vmem:[#allocation4 + $0x760] sm:$0xff]  ;;  %2500 = vmatpush2.bf16.msra.mxu1 %v3882_v23  ;;  %v126_v18 = vld [vmem:[#allocation4 + $0x1a8] sm:$0xff] }
  0x5f   :  { %v3875_v25 = vcombine.high %v305_v20, %v309_v21  ;;  %v169_v26 = vld [vmem:[#allocation4 + $0x300] sm:$0xff]  ;;  %2460 = vmatprep.subr.bf16.mxu0 %v3747_v24  ;;  %v3874_v31 = vcombine.low %v305_v20, %v309_v21  ;;  %v4412_v20 = vcombine.low %v4392_v54, %v4392_v54  ;;  %v3693_v53 = vcombine.high %v122_v17, %v126_v18 }
  0x60   :  { %v173_v27 = vld [vmem:[#allocation4 + $0x320] sm:$0xff]  ;;  %2461 = vmatpush2.bf16.msra.mxu0 %v3746_v30 }
  0x61   :  { %v297_v28 = vld [vmem:[#allocation4 + $0x700] sm:$0xff]  ;;  %v3739_v32 = vcombine.high %v169_v26, %v173_v27  ;;  %2501 = vmatprep.subr.bf16.mxu1 %v3875_v25  ;;  %v3738_v38 = vcombine.low %v169_v26, %v173_v27  ;;  %v114_v26 = vld [vmem:[#allocation4 + $0x148] sm:$0xff] }
  0x62   :  { %v301_v29 = vld [vmem:[#allocation4 + $0x720] sm:$0xff]  ;;  %2502 = vmatpush2.bf16.msra.mxu1 %v3874_v31  ;;  %v118_v27 = vld [vmem:[#allocation4 + $0x168] sm:$0xff] }
  0x63   :  { %v3867_v33 = vcombine.high %v297_v28, %v301_v29  ;;  %v161_v34 = vld [vmem:[#allocation4 + $0x2c0] sm:$0xff]  ;;  %2462 = vmatprep.subr.bf16.mxu0 %v3739_v32  ;;  %v3866_v39 = vcombine.low %v297_v28, %v301_v29  ;;  %v4416_v28 = vcombine.high %v4408_v19, %v4408_v19  ;;  %v3692_v29 = vcombine.low %v122_v17, %v126_v18 }
  0x64   :  { %v165_v35 = vld [vmem:[#allocation4 + $0x2e0] sm:$0xff]  ;;  %2463 = vmatpush2.bf16.msra.mxu0 %v3738_v38 }
  0x65   :  { %v289_v36 = vld [vmem:[#allocation4 + $0x6c0] sm:$0xff]  ;;  %v3731_v40 = vcombine.high %v161_v34, %v165_v35  ;;  %2503 = vmatprep.subr.bf16.mxu1 %v3867_v33  ;;  %v3730_v46 = vcombine.low %v161_v34, %v165_v35  ;;  %v106_v33 = vld [vmem:[#allocation4 + $0x108] sm:$0xff]  ;;  %v3685_v34 = vcombine.high %v114_v26, %v118_v27 }
  0x66   :  { %v293_v37 = vld [vmem:[#allocation4 + $0x6e0] sm:$0xff]  ;;  %2504 = vmatpush2.bf16.msra.mxu1 %v3866_v39  ;;  %v110_v35 = vld [vmem:[#allocation4 + $0x128] sm:$0xff] }
  0x67   :  { %v3859_v41 = vcombine.high %v289_v36, %v293_v37  ;;  %v153_v42 = vld [vmem:[#allocation4 + $0x280] sm:$0xff]  ;;  %2464 = vmatprep.subr.bf16.mxu0 %v3731_v40  ;;  %v3858_v47 = vcombine.low %v289_v36, %v293_v37  ;;  %v3684_v37 = vcombine.low %v114_v26, %v118_v27  ;;  %v190_v26 = vld [vmem:[#allocation4 + $0x3a8] sm:$0xff] }
  0x68   :  { %v157_v43 = vld [vmem:[#allocation4 + $0x2a0] sm:$0xff]  ;;  %2465 = vmatpush2.bf16.msra.mxu0 %v3730_v46 }
  0x69   :  { %v281_v44 = vld [vmem:[#allocation4 + $0x680] sm:$0xff]  ;;  %v3723_v48 = vcombine.high %v153_v42, %v157_v43  ;;  %2505 = vmatprep.subr.bf16.mxu1 %v3859_v41  ;;  %v3722_v56 = vcombine.low %v153_v42, %v157_v43  ;;  %v98_v41 = vld [vmem:[#allocation4 + $0xc8] sm:$0xff]  ;;  %v3677_v42 = vcombine.high %v106_v33, %v110_v35 }
  0x6a   :  { %v285_v45 = vld [vmem:[#allocation4 + $0x6a0] sm:$0xff]  ;;  %2506 = vmatpush2.bf16.msra.mxu1 %v3858_v47  ;;  %v102_v43 = vld [vmem:[#allocation4 + $0xe8] sm:$0xff] }
  0x6b   :  { %v3851_v49 = vcombine.high %v281_v44, %v285_v45  ;;  %v145_v50 = vld [vmem:[#allocation4 + $0x240] sm:$0xff]  ;;  %2466 = vmatprep.subr.bf16.mxu0 %v3723_v48  ;;  %v3850_v57 = vcombine.low %v281_v44, %v285_v45  ;;  %v3676_v45 = vcombine.low %v106_v33, %v110_v35  ;;  %v182_v33 = vld [vmem:[#allocation4 + $0x368] sm:$0xff] }
  0x6c   :  { %v149_v51 = vld [vmem:[#allocation4 + $0x260] sm:$0xff]  ;;  %2467 = vmatpush2.bf16.msra.mxu0 %v3722_v56 }
  0x6d   :  { %v273_v52 = vld [vmem:[#allocation4 + $0x640] sm:$0xff]  ;;  %v3715_v60 = vcombine.high %v145_v50, %v149_v51  ;;  %2507 = vmatprep.subr.bf16.mxu1 %v3851_v49  ;;  %v3714_v2 = vcombine.low %v145_v50, %v149_v51  ;;  %v90_v49 = vld [vmem:[#allocation4 + $0x88] sm:$0xff]  ;;  %v3669_v50 = vcombine.high %v98_v41, %v102_v43 }
  0x6e   :  { %v277_v55 = vld [vmem:[#allocation4 + $0x660] sm:$0xff]  ;;  %2508 = vmatpush2.bf16.msra.mxu1 %v3850_v57  ;;  %v94_v51 = vld [vmem:[#allocation4 + $0xa8] sm:$0xff] }
  0x6f   :  { %v3843_v61 = vcombine.high %v273_v52, %v277_v55  ;;  %v137_v62 = vld [vmem:[#allocation4 + $0x200] sm:$0xff]  ;;  %2468 = vmatprep.subr.bf16.mxu0 %v3715_v60  ;;  %v3842_v3 = vcombine.low %v273_v52, %v277_v55  ;;  %v3668_v55 = vcombine.low %v98_v41, %v102_v43  ;;  %v174_v41 = vld [vmem:[#allocation4 + $0x328] sm:$0xff] }
  0x70   :  { %v141_v63 = vld [vmem:[#allocation4 + $0x220] sm:$0xff]  ;;  %2469 = vmatpush2.bf16.msra.mxu0 %v3714_v2 }
  0x71   :  { %v265_v0 = vld [vmem:[#allocation4 + $0x600] sm:$0xff]  ;;  %v3707_v4 = vcombine.high %v137_v62, %v141_v63  ;;  %2509 = vmatprep.subr.bf16.mxu1 %v3843_v61  ;;  %v3706_v10 = vcombine.low %v137_v62, %v141_v63  ;;  %v82_v61 = vld [vmem:[#allocation4 + $0x48] sm:$0xff]  ;;  %v3661_v62 = vcombine.high %v90_v49, %v94_v51 }
  0x72   :  { %v269_v1 = vld [vmem:[#allocation4 + $0x620] sm:$0xff]  ;;  %2510 = vmatpush2.bf16.msra.mxu1 %v3842_v3  ;;  %v86_v63 = vld [vmem:[#allocation4 + $0x68] sm:$0xff] }
  0x73   :  { %v3835_v5 = vcombine.high %v265_v0, %v269_v1  ;;  %v385_v6 = vld [vmem:[#allocation4 + $0x9c0] sm:$0xff]  ;;  %2470 = vmatprep.subr.bf16.mxu0 %v3707_v4  ;;  %v3834_v11 = vcombine.low %v265_v0, %v269_v1  ;;  %v3660_v1 = vcombine.low %v90_v49, %v94_v51  ;;  %v3652_v9 = vcombine.low %v82_v61, %v86_v63  ;;  %v166_v49 = vld [vmem:[#allocation4 + $0x2e8] sm:$0xff] }
  0x74   :  { %v389_v7 = vld [vmem:[#allocation4 + $0x9e0] sm:$0xff]  ;;  %2471 = vmatpush2.bf16.msra.mxu0 %v3706_v10 }
  0x75   :  { %v3955_v12 = vcombine.high %v385_v6, %v389_v7  ;;  %2511 = vmatprep.subr.bf16.mxu1 %v3835_v5  ;;  %v377_v14 = vld [vmem:[#allocation4 + $0x980] sm:$0xff]  ;;  %v3954_v21 = vcombine.low %v385_v6, %v389_v7  ;;  %v74_v5 = vld [vmem:[#allocation4 + $0x8] sm:$0xff]  ;;  %v3653_v6 = vcombine.high %v82_v61, %v86_v63 }
  0x76   :  { %v381_v15 = vld [vmem:[#allocation4 + $0x9a0] sm:$0xff]  ;;  %2512 = vmatpush2.bf16.msra.mxu1 %v3834_v11  ;;  %v78_v7 = vld [vmem:[#allocation4 + $0x28] sm:$0xff] }
  0x77   :  { %2522 = vmatprep.subr.bf16.mxu0 %v3955_v12  ;;  %v3947_v23 = vcombine.high %v377_v14, %v381_v15  ;;  %v369_v24 = vld [vmem:[#allocation4 + $0x940] sm:$0xff]  ;;  %2563 = vmatprep.subr.bf16.mxu1 %v3701_v13  ;;  %v3946_v54 = vcombine.low %v377_v14, %v381_v15  ;;  %v194_v13 = vld [vmem:[#allocation4 + $0x3c8] sm:$0xff]  ;;  %v3645_v14 = vcombine.high %v74_v5, %v78_v7 }
  0x78   :  { %v373_v25 = vld [vmem:[#allocation4 + $0x960] sm:$0xff]  ;;  %2473 = vmatmul.mubr.bf16.vlgmr.msra.gmra.mxu0 %v4406_v16  ;;  %v198_v15 = vld [vmem:[#allocation4 + $0x3e8] sm:$0xff]  ;;  %v3644_v18 = vcombine.low %v74_v5, %v78_v7 }
  0x79   :  { %2514 = vmatmul.mubr.bf16.vlgmr.msra.gmra.mxu1 %v4412_v20  ;;  %2523 = vmatpush1.bf16.msra.mxu0 %v3954_v21  ;;  %v3939_v30 = vcombine.high %v369_v24, %v373_v25  ;;  %v361_v31 = vld [vmem:[#allocation4 + $0x900] sm:$0xff]  ;;  %v3938_v36 = vcombine.low %v369_v24, %v373_v25  ;;  %v186_v24 = vld [vmem:[#allocation4 + $0x388] sm:$0xff]  ;;  %v3765_v25 = vcombine.high %v194_v13, %v198_v15 }
  0x7a   :  { %2564 = vmatpush1.bf16.msra.mxu1 %v3700_v22  ;;  %2524 = vmatprep.subr.bf16.mxu0 %v3947_v23  ;;  %v365_v32 = vld [vmem:[#allocation4 + $0x920] sm:$0xff]  ;;  %v3764_v27 = vcombine.low %v194_v13, %v198_v15  ;;  %v3756_v35 = vcombine.low %v186_v24, %v190_v26  ;;  %v158_v61 = vld [vmem:[#allocation4 + $0x2a8] sm:$0xff] }
  0x7b   :  { %2565 = vmatprep.subr.bf16.mxu1 %v3693_v53  ;;  %2554 = vmatprep.mubr.bf16.mxu0 %v4416_v28  ;;  %v3931_v38 = vcombine.high %v361_v31, %v365_v32  ;;  %v353_v39 = vld [vmem:[#allocation4 + $0x8c0] sm:$0xff]  ;;  %v3930_v44 = vcombine.low %v361_v31, %v365_v32  ;;  %v178_v31 = vld [vmem:[#allocation4 + $0x348] sm:$0xff]  ;;  %v3757_v32 = vcombine.high %v186_v24, %v190_v26 }
  0x7c   :  { %2595 = vmatprep.mubr.bf16.mxu1 %v4396_v58  ;;  %v357_v40 = vld [vmem:[#allocation4 + $0x8e0] sm:$0xff]  ;;  %v3748_v43 = vcombine.low %v178_v31, %v182_v33  ;;  %v150_v5 = vld [vmem:[#allocation4 + $0x268] sm:$0xff] }
  0x7d   :  { %2525 = vmatpush1.bf16.msra.mxu0 %v3946_v54  ;;  %v3923_v46 = vcombine.high %v353_v39, %v357_v40  ;;  %v345_v47 = vld [vmem:[#allocation4 + $0x880] sm:$0xff]  ;;  %v3922_v52 = vcombine.low %v353_v39, %v357_v40  ;;  %v170_v39 = vld [vmem:[#allocation4 + $0x308] sm:$0xff]  ;;  %v3749_v40 = vcombine.high %v178_v31, %v182_v33 }
  0x7e   :  { %2566 = vmatpush1.bf16.msra.mxu1 %v3692_v29  ;;  %2526 = vmatprep.subr.bf16.mxu0 %v3939_v30  ;;  %v349_v48 = vld [vmem:[#allocation4 + $0x8a0] sm:$0xff]  ;;  %v3740_v51 = vcombine.low %v170_v39, %v174_v41  ;;  %v142_v13 = vld [vmem:[#allocation4 + $0x228] sm:$0xff] }
  0x7f   :  { %2567 = vmatprep.subr.bf16.mxu1 %v3685_v34  ;;  %v3915_v56 = vcombine.high %v345_v47, %v349_v48  ;;  %v337_v57 = vld [vmem:[#allocation4 + $0x840] sm:$0xff]  ;;  %v3914_v0 = vcombine.low %v345_v47, %v349_v48  ;;  %v162_v47 = vld [vmem:[#allocation4 + $0x2c8] sm:$0xff]  ;;  %v3741_v48 = vcombine.high %v170_v39, %v174_v41 }
  0x80   :  { %v341_v60 = vld [vmem:[#allocation4 + $0x860] sm:$0xff]  ;;  %v3732_v63 = vcombine.low %v162_v47, %v166_v49  ;;  %v390_v24 = vld [vmem:[#allocation4 + $0x9e8] sm:$0xff] }
  0x81   :  { %2527 = vmatpush1.bf16.msra.mxu0 %v3938_v36  ;;  %v3907_v2 = vcombine.high %v337_v57, %v341_v60  ;;  %v329_v3 = vld [vmem:[#allocation4 + $0x800] sm:$0xff]  ;;  %v3906_v8 = vcombine.low %v337_v57, %v341_v60  ;;  %v154_v57 = vld [vmem:[#allocation4 + $0x288] sm:$0xff]  ;;  %v3733_v60 = vcombine.high %v162_v47, %v166_v49 }
  0x82   :  { %2568 = vmatpush1.bf16.msra.mxu1 %v3684_v37  ;;  %2528 = vmatprep.subr.bf16.mxu0 %v3931_v38  ;;  %v333_v4 = vld [vmem:[#allocation4 + $0x820] sm:$0xff]  ;;  %v3724_v7 = vcombine.low %v154_v57, %v158_v61  ;;  %v382_v31 = vld [vmem:[#allocation4 + $0x9a8] sm:$0xff] }
  0x83   :  { %2569 = vmatprep.subr.bf16.mxu1 %v3677_v42  ;;  %v3899_v10 = vcombine.high %v329_v3, %v333_v4  ;;  %v449_v11 = vld [vmem:[#allocation4 + $0xbc0] sm:$0xff]  ;;  %v3898_v17 = vcombine.low %v329_v3, %v333_v4  ;;  %v146_v3 = vld [vmem:[#allocation4 + $0x248] sm:$0xff]  ;;  %v3725_v4 = vcombine.high %v154_v57, %v158_v61 }
  0x84   :  { %v453_v12 = vld [vmem:[#allocation4 + $0xbe0] sm:$0xff]  ;;  %v3716_v15 = vcombine.low %v146_v3, %v150_v5  ;;  %v370_v39 = vld [vmem:[#allocation4 + $0x948] sm:$0xff] }
  0x85   :  { %2529 = vmatpush1.bf16.msra.mxu0 %v3930_v44  ;;  %v4019_v21 = vcombine.high %v449_v11, %v453_v12  ;;  %v441_v22 = vld [vmem:[#allocation4 + $0xb80] sm:$0xff]  ;;  %v4018_v53 = vcombine.low %v449_v11, %v453_v12  ;;  %v138_v11 = vld [vmem:[#allocation4 + $0x208] sm:$0xff]  ;;  %v3717_v12 = vcombine.high %v146_v3, %v150_v5 }
  0x86   :  { %2570 = vmatpush1.bf16.msra.mxu1 %v3676_v45  ;;  %2530 = vmatprep.subr.bf16.mxu0 %v3923_v46  ;;  %v445_v23 = vld [vmem:[#allocation4 + $0xba0] sm:$0xff]  ;;  %v3708_v26 = vcombine.low %v138_v11, %v142_v13  ;;  %v366_v47 = vld [vmem:[#allocation4 + $0x928] sm:$0xff] }
  0x87   :  { %2571 = vmatprep.subr.bf16.mxu1 %v3669_v50  ;;  %v4011_v54 = vcombine.high %v441_v22, %v445_v23  ;;  %v433_v29 = vld [vmem:[#allocation4 + $0xb40] sm:$0xff]  ;;  %v4010_v34 = vcombine.low %v441_v22, %v445_v23  ;;  %v386_v22 = vld [vmem:[#allocation4 + $0x9c8] sm:$0xff]  ;;  %v3709_v23 = vcombine.high %v138_v11, %v142_v13 }
  0x88   :  { %v437_v30 = vld [vmem:[#allocation4 + $0xb60] sm:$0xff]  ;;  %v358_v57 = vld [vmem:[#allocation4 + $0x8e8] sm:$0xff] }
  0x89   :  { %2531 = vmatpush1.bf16.msra.mxu0 %v3922_v52  ;;  %v4003_v36 = vcombine.high %v433_v29, %v437_v30  ;;  %v425_v37 = vld [vmem:[#allocation4 + $0xb00] sm:$0xff]  ;;  %v4002_v42 = vcombine.low %v433_v29, %v437_v30  ;;  %v378_v29 = vld [vmem:[#allocation4 + $0x988] sm:$0xff]  ;;  %v3957_v30 = vcombine.high %v386_v22, %v390_v24 }
  0x8a   :  { %2572 = vmatpush1.bf16.msra.mxu1 %v3668_v55  ;;  %2532 = vmatprep.subr.bf16.mxu0 %v3915_v56  ;;  %v429_v38 = vld [vmem:[#allocation4 + $0xb20] sm:$0xff]  ;;  %v350_v3 = vld [vmem:[#allocation4 + $0x8a8] sm:$0xff] }
  0x8b   :  { %2573 = vmatprep.subr.bf16.mxu1 %v3661_v62  ;;  %v3995_v44 = vcombine.high %v425_v37, %v429_v38  ;;  %v417_v45 = vld [vmem:[#allocation4 + $0xac0] sm:$0xff]  ;;  %v3994_v50 = vcombine.low %v425_v37, %v429_v38  ;;  %v242_v37 = vld [vmem:[#allocation4 + $0x548] sm:$0xff] }
  0x8c   :  { %v421_v46 = vld [vmem:[#allocation4 + $0xae0] sm:$0xff]  ;;  %v246_v38 = vld [vmem:[#allocation4 + $0x568] sm:$0xff] }
  0x8d   :  { %2533 = vmatpush1.bf16.msra.mxu0 %v3914_v0  ;;  %v3987_v52 = vcombine.high %v417_v45, %v421_v46  ;;  %v409_v55 = vld [vmem:[#allocation4 + $0xa80] sm:$0xff]  ;;  %v3986_v62 = vcombine.low %v417_v45, %v421_v46  ;;  %v238_v45 = vld [vmem:[#allocation4 + $0x528] sm:$0xff] }
  0x8e   :  { %2574 = vmatpush1.bf16.msra.mxu1 %v3660_v1  ;;  %2534 = vmatprep.subr.bf16.mxu0 %v3907_v2  ;;  %v413_v56 = vld [vmem:[#allocation4 + $0xaa0] sm:$0xff]  ;;  %v362_v46 = vld [vmem:[#allocation4 + $0x908] sm:$0xff] }
  0x8f   :  { %2575 = vmatprep.subr.bf16.mxu1 %v3653_v6  ;;  %v3979_v0 = vcombine.high %v409_v55, %v413_v56  ;;  %v401_v1 = vld [vmem:[#allocation4 + $0xa40] sm:$0xff]  ;;  %v3978_v6 = vcombine.low %v409_v55, %v413_v56  ;;  %v230_v55 = vld [vmem:[#allocation4 + $0x4e8] sm:$0xff]  ;;  %v3932_v61 = vcombine.low %v362_v46, %v366_v47 }
  0x90   :  { %v405_v2 = vld [vmem:[#allocation4 + $0xa60] sm:$0xff]  ;;  %v354_v56 = vld [vmem:[#allocation4 + $0x8c8] sm:$0xff] }
  0x91   :  { %2535 = vmatpush1.bf16.msra.mxu0 %v3906_v8  ;;  %v3971_v8 = vcombine.high %v401_v1, %v405_v2  ;;  %v3924_v5 = vcombine.low %v354_v56, %v358_v57  ;;  %v342_v11 = vld [vmem:[#allocation4 + $0x868] sm:$0xff] }
  0x92   :  { %2576 = vmatpush1.bf16.msra.mxu1 %v3652_v9  ;;  %2536 = vmatprep.subr.bf16.mxu0 %v3899_v10  ;;  %v393_v9 = vld [vmem:[#allocation4 + $0xa00] sm:$0xff] }
  0x93   :  { %2577 = vmatprep.subr.bf16.mxu1 %v3645_v14  ;;  %v397_v10 = vld [vmem:[#allocation4 + $0xa20] sm:$0xff]  ;;  %v3970_v14 = vcombine.low %v401_v1, %v405_v2  ;;  %v222_v1 = vld [vmem:[#allocation4 + $0x4a8] sm:$0xff] }
  0x94   :  { %v346_v2 = vld [vmem:[#allocation4 + $0x888] sm:$0xff] }
  0x95   :  { %2537 = vmatpush1.bf16.msra.mxu0 %v3898_v17  ;;  %v3963_v17 = vcombine.high %v393_v9, %v397_v10  ;;  %v3916_v13 = vcombine.low %v346_v2, %v350_v3 }
  0x96   :  { %2578 = vmatpush1.bf16.msra.mxu1 %v3644_v18  ;;  %2538 = vmatprep.subr.bf16.mxu0 %v4019_v21  ;;  %v258_v18 = vld [vmem:[#allocation4 + $0x5c8] sm:$0xff] }
  0x97   :  { %2579 = vmatprep.subr.bf16.mxu1 %v3765_v25  ;;  %v262_v21 = vld [vmem:[#allocation4 + $0x5e8] sm:$0xff]  ;;  %v3962_v25 = vcombine.low %v393_v9, %v397_v10 }
  0x98   :  { %v3828_v33 = vcombine.low %v258_v18, %v262_v21  ;;  %v214_v9 = vld [vmem:[#allocation4 + $0x468] sm:$0xff] }
  0x99   :  { %2539 = vmatpush2.bf16.msra.mxu0 %v4018_v53  ;;  %v3829_v53 = vcombine.high %v258_v18, %v262_v21  ;;  %v338_v10 = vld [vmem:[#allocation4 + $0x848] sm:$0xff] }
  0x9a   :  { %2580 = vmatpush2.bf16.msra.mxu1 %v3764_v27  ;;  %2540 = vmatprep.subr.bf16.mxu0 %v4011_v54  ;;  %v250_v27 = vld [vmem:[#allocation4 + $0x588] sm:$0xff] }
  0x9b   :  { %2581 = vmatprep.subr.bf16.mxu1 %v3757_v32  ;;  %v254_v54 = vld [vmem:[#allocation4 + $0x5a8] sm:$0xff]  ;;  %v4424_v32 = vcombine.low %v4408_v19, %v4408_v19  ;;  %v3948_v19 = vcombine.low %v378_v29, %v382_v31 }
  0x9c   :  { %v3820_v41 = vcombine.low %v250_v27, %v254_v54  ;;  %v206_v18 = vld [vmem:[#allocation4 + $0x428] sm:$0xff] }
  0x9d   :  { %2541 = vmatpush2.bf16.msra.mxu0 %v4010_v34  ;;  %v3956_v34 = vcombine.low %v386_v22, %v390_v24  ;;  %v330_v21 = vld [vmem:[#allocation4 + $0x808] sm:$0xff]  ;;  %v3908_v24 = vcombine.low %v338_v10, %v342_v11 }
  0x9e   :  { %2582 = vmatpush2.bf16.msra.mxu1 %v3756_v35  ;;  %2542 = vmatprep.subr.bf16.mxu0 %v4003_v36  ;;  %v3821_v35 = vcombine.high %v250_v27, %v254_v54  ;;  %v3949_v36 = vcombine.high %v378_v29, %v382_v31  ;;  %v334_v22 = vld [vmem:[#allocation4 + $0x828] sm:$0xff] }
  0x9f   :  { %2583 = vmatprep.subr.bf16.mxu1 %v3749_v40  ;;  %v374_v40 = vld [vmem:[#allocation4 + $0x968] sm:$0xff]  ;;  %v3900_v31 = vcombine.low %v330_v21, %v334_v22 }
  0xa0   :  { %v3940_v49 = vcombine.low %v370_v39, %v374_v40  ;;  %v326_v27 = vld [vmem:[#allocation4 + $0x7e8] sm:$0xff] }
  0xa1   :  { %2543 = vmatpush2.bf16.msra.mxu0 %v4002_v42  ;;  %v3813_v42 = vcombine.high %v242_v37, %v246_v38  ;;  %v450_v54 = vld [vmem:[#allocation4 + $0xbc8] sm:$0xff] }
  0xa2   :  { %2584 = vmatpush2.bf16.msra.mxu1 %v3748_v43  ;;  %2544 = vmatprep.subr.bf16.mxu0 %v3995_v44  ;;  %v3941_v43 = vcombine.high %v370_v39, %v374_v40  ;;  %v234_v44 = vld [vmem:[#allocation4 + $0x508] sm:$0xff] }
  0xa3   :  { %2585 = vmatprep.subr.bf16.mxu1 %v3741_v48  ;;  %v3812_v48 = vcombine.low %v242_v37, %v246_v38  ;;  %v454_v29 = vld [vmem:[#allocation4 + $0xbe8] sm:$0xff] }
  0xa4   :  { %v442_v37 = vld [vmem:[#allocation4 + $0xb88] sm:$0xff]  ;;  %v4020_v40 = vcombine.low %v450_v54, %v454_v29 }
  0xa5   :  { %2545 = vmatpush2.bf16.msra.mxu0 %v3994_v50  ;;  %v3805_v50 = vcombine.high %v234_v44, %v238_v45  ;;  %v446_v38 = vld [vmem:[#allocation4 + $0xba8] sm:$0xff] }
  0xa6   :  { %2586 = vmatpush2.bf16.msra.mxu1 %v3740_v51  ;;  %2546 = vmatprep.subr.bf16.mxu0 %v3987_v52  ;;  %v3933_v51 = vcombine.high %v362_v46, %v366_v47  ;;  %v226_v52 = vld [vmem:[#allocation4 + $0x4c8] sm:$0xff]  ;;  %v4012_v47 = vcombine.low %v442_v37, %v446_v38 }
  0xa7   :  { %2587 = vmatprep.subr.bf16.mxu1 %v3733_v60  ;;  %v3804_v60 = vcombine.low %v234_v44, %v238_v45  ;;  %v434_v44 = vld [vmem:[#allocation4 + $0xb48] sm:$0xff] }
  0xa8   :  { %v438_v45 = vld [vmem:[#allocation4 + $0xb68] sm:$0xff] }
  0xa9   :  { %2547 = vmatpush2.bf16.msra.mxu0 %v3986_v62  ;;  %v3797_v62 = vcombine.high %v226_v52, %v230_v55 }
  0xaa   :  { %2588 = vmatpush2.bf16.msra.mxu1 %v3732_v63  ;;  %2548 = vmatprep.subr.bf16.mxu0 %v3979_v0  ;;  %v3925_v63 = vcombine.high %v354_v56, %v358_v57  ;;  %v218_v0 = vld [vmem:[#allocation4 + $0x488] sm:$0xff]  ;;  %v4004_v57 = vcombine.low %v434_v44, %v438_v45 }
  0xab   :  { %2589 = vmatprep.subr.bf16.mxu1 %v3725_v4  ;;  %v3796_v4 = vcombine.low %v226_v52, %v230_v55  ;;  %v426_v52 = vld [vmem:[#allocation4 + $0xb08] sm:$0xff] }
  0xac   :  { %v430_v55 = vld [vmem:[#allocation4 + $0xb28] sm:$0xff] }
  0xad   :  { %2549 = vmatpush2.bf16.msra.mxu0 %v3978_v6  ;;  %v3789_v6 = vcombine.high %v218_v0, %v222_v1 }
  0xae   :  { %2590 = vmatpush2.bf16.msra.mxu1 %v3724_v7  ;;  %2550 = vmatprep.subr.bf16.mxu0 %v3971_v8  ;;  %v3917_v7 = vcombine.high %v346_v2, %v350_v3  ;;  %v210_v8 = vld [vmem:[#allocation4 + $0x448] sm:$0xff]  ;;  %v3996_v3 = vcombine.low %v426_v52, %v430_v55 }
  0xaf   :  { %2591 = vmatprep.subr.bf16.mxu1 %v3717_v12  ;;  %v3788_v12 = vcombine.low %v218_v0, %v222_v1  ;;  %v418_v0 = vld [vmem:[#allocation4 + $0xac8] sm:$0xff] }
  0xb0   :  { %v422_v1 = vld [vmem:[#allocation4 + $0xae8] sm:$0xff] }
  0xb1   :  { %2551 = vmatpush2.bf16.msra.mxu0 %v3970_v14  ;;  %v3781_v14 = vcombine.high %v210_v8, %v214_v9 }
  0xb2   :  { %2592 = vmatpush2.bf16.msra.mxu1 %v3716_v15  ;;  %2552 = vmatprep.subr.bf16.mxu0 %v3963_v17  ;;  %v3909_v15 = vcombine.high %v338_v10, %v342_v11  ;;  %v202_v17 = vld [vmem:[#allocation4 + $0x408] sm:$0xff]  ;;  %v3988_v11 = vcombine.low %v418_v0, %v422_v1 }
  0xb3   :  { %2593 = vmatprep.subr.bf16.mxu1 %v3709_v23  ;;  %v3780_v23 = vcombine.low %v210_v8, %v214_v9  ;;  %v410_v8 = vld [vmem:[#allocation4 + $0xa88] sm:$0xff] }
  0xb4   :  { %v414_v9 = vld [vmem:[#allocation4 + $0xaa8] sm:$0xff] }
  0xb5   :  { %2553 = vmatpush2.bf16.msra.mxu0 %v3962_v25  ;;  %v3773_v25 = vcombine.high %v202_v17, %v206_v18 }
  0xb6   :  { %2594 = vmatpush2.bf16.msra.mxu1 %v3708_v26  ;;  %2604 = vmatprep.subr.bf16.mxu0 %v3829_v53  ;;  %v3901_v26 = vcombine.high %v330_v21, %v334_v22  ;;  %v322_v53 = vld [vmem:[#allocation4 + $0x7c8] sm:$0xff]  ;;  %v3980_v22 = vcombine.low %v410_v8, %v414_v9 }
  0xb7   :  { %2645 = vmatprep.subr.bf16.mxu1 %v3957_v30  ;;  %v3772_v30 = vcombine.low %v202_v17, %v206_v18  ;;  %v3892_v39 = vcombine.low %v322_v53, %v326_v27  ;;  %v402_v17 = vld [vmem:[#allocation4 + $0xa48] sm:$0xff] }
  0xb8   :  { %2555 = vmatmul.mubr.bf16.vlgmr.msra.gmra.mxu0 %v4424_v32  ;;  %v406_v18 = vld [vmem:[#allocation4 + $0xa68] sm:$0xff] }
  0xb9   :  { %2596 = vmatmul.mubr.bf16.vlgmr.msra.gmra.mxu1 %v4406_v16  ;;  %2605 = vmatpush1.bf16.msra.mxu0 %v3828_v33  ;;  %v3893_v33 = vcombine.high %v322_v53, %v326_v27  ;;  %v394_v53 = vld [vmem:[#allocation4 + $0xa08] sm:$0xff] }
  0xba   :  { %2646 = vmatpush1.bf16.msra.mxu1 %v3956_v34  ;;  %2606 = vmatprep.subr.bf16.mxu0 %v3821_v35  ;;  %v4021_v34 = vcombine.high %v450_v54, %v454_v29  ;;  %v314_v35 = vld [vmem:[#allocation4 + $0x788] sm:$0xff]  ;;  %v3972_v29 = vcombine.low %v402_v17, %v406_v18 }
  0xbb   :  { %2647 = vmatprep.subr.bf16.mxu1 %v3949_v36  ;;  %2636 = vmatprep.mubr.bf16.mxu0 %v4400_v59  ;;  %v318_v36 = vld [vmem:[#allocation4 + $0x7a8] sm:$0xff] }
  0xbc   :  { %2677 = vmatprep.mubr.bf16.mxu1 %v4416_v28  ;;  %v3884_v46 = vcombine.low %v314_v35, %v318_v36  ;;  %v398_v27 = vld [vmem:[#allocation4 + $0xa28] sm:$0xff] }
  0xbd   :  { %2607 = vmatpush1.bf16.msra.mxu0 %v3820_v41  ;;  %v3885_v41 = vcombine.high %v314_v35, %v318_v36  ;;  %v259_v35 = vld [vmem:[#allocation4 + $0x5d0] sm:$0xff] }
  0xbe   :  { %2648 = vmatpush1.bf16.msra.mxu1 %v3948_v19  ;;  %2608 = vmatprep.subr.bf16.mxu0 %v3813_v42  ;;  %v4013_v19 = vcombine.high %v442_v37, %v446_v38  ;;  %v306_v42 = vld [vmem:[#allocation4 + $0x748] sm:$0xff]  ;;  %v263_v36 = vld [vmem:[#allocation4 + $0x5f0] sm:$0xff]  ;;  %v3964_v38 = vcombine.low %v394_v53, %v398_v27 }
  0xbf   :  { %2649 = vmatprep.subr.bf16.mxu1 %v3941_v43  ;;  %v310_v43 = vld [vmem:[#allocation4 + $0x768] sm:$0xff] }
  0xc0   :  { %v3876_v56 = vcombine.low %v306_v42, %v310_v43 }
  0xc1   :  { %2609 = vmatpush1.bf16.msra.mxu0 %v3812_v48  ;;  %v3877_v48 = vcombine.high %v306_v42, %v310_v43  ;;  %v251_v42 = vld [vmem:[#allocation4 + $0x590] sm:$0xff] }
  0xc2   :  { %2650 = vmatpush1.bf16.msra.mxu1 %v3940_v49  ;;  %2610 = vmatprep.subr.bf16.mxu0 %v3805_v50  ;;  %v4005_v49 = vcombine.high %v434_v44, %v438_v45  ;;  %v298_v50 = vld [vmem:[#allocation4 + $0x708] sm:$0xff]  ;;  %v255_v43 = vld [vmem:[#allocation4 + $0x5b0] sm:$0xff]  ;;  %v3830_v45 = vcombine.low %v259_v35, %v263_v36 }
  0xc3   :  { %2651 = vmatprep.subr.bf16.mxu1 %v3933_v51  ;;  %v302_v51 = vld [vmem:[#allocation4 + $0x728] sm:$0xff] }
  0xc4   :  { %v3868_v2 = vcombine.low %v298_v50, %v302_v51 }
  0xc5   :  { %2611 = vmatpush1.bf16.msra.mxu0 %v3804_v60  ;;  %v3869_v60 = vcombine.high %v298_v50, %v302_v51  ;;  %v243_v50 = vld [vmem:[#allocation4 + $0x550] sm:$0xff] }
  0xc6   :  { %2652 = vmatpush1.bf16.msra.mxu1 %v3932_v61  ;;  %2612 = vmatprep.subr.bf16.mxu0 %v3797_v62  ;;  %v3997_v61 = vcombine.high %v426_v52, %v430_v55  ;;  %v290_v62 = vld [vmem:[#allocation4 + $0x6c8] sm:$0xff]  ;;  %v247_v51 = vld [vmem:[#allocation4 + $0x570] sm:$0xff]  ;;  %v3822_v55 = vcombine.low %v251_v42, %v255_v43 }
  0xc7   :  { %2653 = vmatprep.subr.bf16.mxu1 %v3925_v63  ;;  %v294_v63 = vld [vmem:[#allocation4 + $0x6e8] sm:$0xff] }
  0xc8   :  { %v3860_v10 = vcombine.low %v290_v62, %v294_v63 }
  0xc9   :  { %2613 = vmatpush1.bf16.msra.mxu0 %v3796_v4  ;;  %v3861_v4 = vcombine.high %v290_v62, %v294_v63  ;;  %v235_v62 = vld [vmem:[#allocation4 + $0x510] sm:$0xff] }
  0xca   :  { %2654 = vmatpush1.bf16.msra.mxu1 %v3924_v5  ;;  %2614 = vmatprep.subr.bf16.mxu0 %v3789_v6  ;;  %v3989_v5 = vcombine.high %v418_v0, %v422_v1  ;;  %v282_v6 = vld [vmem:[#allocation4 + $0x688] sm:$0xff]  ;;  %v239_v63 = vld [vmem:[#allocation4 + $0x530] sm:$0xff]  ;;  %v3814_v1 = vcombine.low %v243_v50, %v247_v51 }
  0xcb   :  { %2655 = vmatprep.subr.bf16.mxu1 %v3917_v7  ;;  %v286_v7 = vld [vmem:[#allocation4 + $0x6a8] sm:$0xff] }
  0xcc   :  { %v3852_v21 = vcombine.low %v282_v6, %v286_v7 }
  0xcd   :  { %2615 = vmatpush1.bf16.msra.mxu0 %v3788_v12  ;;  %v3853_v12 = vcombine.high %v282_v6, %v286_v7  ;;  %v227_v6 = vld [vmem:[#allocation4 + $0x4d0] sm:$0xff] }
  0xce   :  { %2656 = vmatpush1.bf16.msra.mxu1 %v3916_v13  ;;  %2616 = vmatprep.subr.bf16.mxu0 %v3781_v14  ;;  %v3981_v13 = vcombine.high %v410_v8, %v414_v9  ;;  %v274_v14 = vld [vmem:[#allocation4 + $0x648] sm:$0xff]  ;;  %v231_v7 = vld [vmem:[#allocation4 + $0x4f0] sm:$0xff]  ;;  %v3806_v9 = vcombine.low %v235_v62, %v239_v63 }
  0xcf   :  { %2657 = vmatprep.subr.bf16.mxu1 %v3909_v15  ;;  %v278_v15 = vld [vmem:[#allocation4 + $0x668] sm:$0xff] }
  0xd0   :  { %v3844_v54 = vcombine.low %v274_v14, %v278_v15 }
  0xd1   :  { %2617 = vmatpush1.bf16.msra.mxu0 %v3780_v23  ;;  %v3845_v23 = vcombine.high %v274_v14, %v278_v15  ;;  %v219_v14 = vld [vmem:[#allocation4 + $0x490] sm:$0xff] }
  0xd2   :  { %2658 = vmatpush1.bf16.msra.mxu1 %v3908_v24  ;;  %2618 = vmatprep.subr.bf16.mxu0 %v3773_v25  ;;  %v3973_v24 = vcombine.high %v402_v17, %v406_v18  ;;  %v266_v25 = vld [vmem:[#allocation4 + $0x608] sm:$0xff]  ;;  %v223_v15 = vld [vmem:[#allocation4 + $0x4b0] sm:$0xff]  ;;  %v3798_v18 = vcombine.low %v227_v6, %v231_v7 }
  0xd3   :  { %2659 = vmatprep.subr.bf16.mxu1 %v3901_v26  ;;  %v270_v26 = vld [vmem:[#allocation4 + $0x628] sm:$0xff] }
  0xd4   :  { %v3836_v37 = vcombine.low %v266_v25, %v270_v26 }
  0xd5   :  { %2619 = vmatpush1.bf16.msra.mxu0 %v3772_v30  ;;  %v3837_v30 = vcombine.high %v266_v25, %v270_v26  ;;  %v211_v25 = vld [vmem:[#allocation4 + $0x450] sm:$0xff] }
  0xd6   :  { %2660 = vmatpush1.bf16.msra.mxu1 %v3900_v31  ;;  %2620 = vmatprep.subr.bf16.mxu0 %v3893_v33  ;;  %v3965_v31 = vcombine.high %v394_v53, %v398_v27  ;;  %v131_v33 = vld [vmem:[#allocation4 + $0x1d0] sm:$0xff]  ;;  %v3790_v27 = vcombine.low %v219_v14, %v223_v15 }
  0xd7   :  { %2661 = vmatprep.subr.bf16.mxu1 %v4021_v34  ;;  %v135_v34 = vld [vmem:[#allocation4 + $0x1f0] sm:$0xff] }
  0xd8   :  { %v3702_v44 = vcombine.low %v131_v33, %v135_v34  ;;  %v215_v26 = vld [vmem:[#allocation4 + $0x470] sm:$0xff] }
  0xd9   :  { %2621 = vmatpush2.bf16.msra.mxu0 %v3892_v39  ;;  %v3703_v39 = vcombine.high %v131_v33, %v135_v34  ;;  %v203_v33 = vld [vmem:[#allocation4 + $0x410] sm:$0xff] }
  0xda   :  { %2662 = vmatpush2.bf16.msra.mxu1 %v4020_v40  ;;  %2622 = vmatprep.subr.bf16.mxu0 %v3885_v41  ;;  %v3831_v40 = vcombine.high %v259_v35, %v263_v36  ;;  %v123_v41 = vld [vmem:[#allocation4 + $0x190] sm:$0xff]  ;;  %v3782_v36 = vcombine.low %v211_v25, %v215_v26 }
  0xdb   :  { %2663 = vmatprep.subr.bf16.mxu1 %v4013_v19  ;;  %v127_v19 = vld [vmem:[#allocation4 + $0x1b0] sm:$0xff] }
  0xdc   :  { %v3694_v52 = vcombine.low %v123_v41, %v127_v19  ;;  %v207_v34 = vld [vmem:[#allocation4 + $0x430] sm:$0xff] }
  0xdd   :  { %2623 = vmatpush2.bf16.msra.mxu0 %v3884_v46  ;;  %v3695_v46 = vcombine.high %v123_v41, %v127_v19  ;;  %v323_v41 = vld [vmem:[#allocation4 + $0x7d0] sm:$0xff] }
  0xde   :  { %2664 = vmatpush2.bf16.msra.mxu1 %v4012_v47  ;;  %2624 = vmatprep.subr.bf16.mxu0 %v3877_v48  ;;  %v3823_v47 = vcombine.high %v251_v42, %v255_v43  ;;  %v115_v48 = vld [vmem:[#allocation4 + $0x150] sm:$0xff]  ;;  %v3774_v43 = vcombine.low %v203_v33, %v207_v34 }
  0xdf   :  { %2665 = vmatprep.subr.bf16.mxu1 %v4005_v49  ;;  %v119_v49 = vld [vmem:[#allocation4 + $0x170] sm:$0xff] }
  0xe0   :  { %v3686_v0 = vcombine.low %v115_v48, %v119_v49  ;;  %v327_v19 = vld [vmem:[#allocation4 + $0x7f0] sm:$0xff] }
  0xe1   :  { %2625 = vmatpush2.bf16.msra.mxu0 %v3876_v56  ;;  %v3687_v56 = vcombine.high %v115_v48, %v119_v49  ;;  %v315_v48 = vld [vmem:[#allocation4 + $0x790] sm:$0xff] }
  0xe2   :  { %2666 = vmatpush2.bf16.msra.mxu1 %v4004_v57  ;;  %2626 = vmatprep.subr.bf16.mxu0 %v3869_v60  ;;  %v3815_v57 = vcombine.high %v243_v50, %v247_v51  ;;  %v107_v60 = vld [vmem:[#allocation4 + $0x110] sm:$0xff]  ;;  %v3894_v51 = vcombine.low %v323_v41, %v327_v19 }
  0xe3   :  { %2667 = vmatprep.subr.bf16.mxu1 %v3997_v61  ;;  %v111_v61 = vld [vmem:[#allocation4 + $0x130] sm:$0xff] }
  0xe4   :  { %v3678_v8 = vcombine.low %v107_v60, %v111_v61  ;;  %v319_v49 = vld [vmem:[#allocation4 + $0x7b0] sm:$0xff] }
  0xe5   :  { %2627 = vmatpush2.bf16.msra.mxu0 %v3868_v2  ;;  %v3679_v2 = vcombine.high %v107_v60, %v111_v61  ;;  %v307_v60 = vld [vmem:[#allocation4 + $0x750] sm:$0xff] }
  0xe6   :  { %2668 = vmatpush2.bf16.msra.mxu1 %v3996_v3  ;;  %2628 = vmatprep.subr.bf16.mxu0 %v3861_v4  ;;  %v3807_v3 = vcombine.high %v235_v62, %v239_v63  ;;  %v99_v4 = vld [vmem:[#allocation4 + $0xd0] sm:$0xff]  ;;  %v3886_v63 = vcombine.low %v315_v48, %v319_v49 }
  0xe7   :  { %2669 = vmatprep.subr.bf16.mxu1 %v3989_v5  ;;  %v103_v5 = vld [vmem:[#allocation4 + $0xf0] sm:$0xff] }
  0xe8   :  { %v3670_v17 = vcombine.low %v99_v4, %v103_v5  ;;  %v311_v61 = vld [vmem:[#allocation4 + $0x770] sm:$0xff] }
  0xe9   :  { %2629 = vmatpush2.bf16.msra.mxu0 %v3860_v10  ;;  %v3671_v10 = vcombine.high %v99_v4, %v103_v5  ;;  %v299_v4 = vld [vmem:[#allocation4 + $0x710] sm:$0xff] }
  0xea   :  { %2670 = vmatpush2.bf16.msra.mxu1 %v3988_v11  ;;  %2630 = vmatprep.subr.bf16.mxu0 %v3853_v12  ;;  %v3799_v11 = vcombine.high %v227_v6, %v231_v7  ;;  %v91_v12 = vld [vmem:[#allocation4 + $0x90] sm:$0xff]  ;;  %v3878_v7 = vcombine.low %v307_v60, %v311_v61 }
  0xeb   :  { %2671 = vmatprep.subr.bf16.mxu1 %v3981_v13  ;;  %v95_v13 = vld [vmem:[#allocation4 + $0xb0] sm:$0xff] }
  0xec   :  { %v3662_v53 = vcombine.low %v91_v12, %v95_v13  ;;  %v303_v5 = vld [vmem:[#allocation4 + $0x730] sm:$0xff] }
  0xed   :  { %2631 = vmatpush2.bf16.msra.mxu0 %v3852_v21  ;;  %v3663_v21 = vcombine.high %v91_v12, %v95_v13  ;;  %v291_v12 = vld [vmem:[#allocation4 + $0x6d0] sm:$0xff] }
  0xee   :  { %2672 = vmatpush2.bf16.msra.mxu1 %v3980_v22  ;;  %2632 = vmatprep.subr.bf16.mxu0 %v3845_v23  ;;  %v3791_v22 = vcombine.high %v219_v14, %v223_v15  ;;  %v83_v23 = vld [vmem:[#allocation4 + $0x50] sm:$0xff]  ;;  %v3870_v15 = vcombine.low %v299_v4, %v303_v5 }
  0xef   :  { %2673 = vmatprep.subr.bf16.mxu1 %v3973_v24  ;;  %v87_v24 = vld [vmem:[#allocation4 + $0x70] sm:$0xff] }
  0xf0   :  { %v3654_v35 = vcombine.low %v83_v23, %v87_v24  ;;  %v295_v13 = vld [vmem:[#allocation4 + $0x6f0] sm:$0xff] }
  0xf1   :  { %2633 = vmatpush2.bf16.msra.mxu0 %v3844_v54  ;;  %v3655_v54 = vcombine.high %v83_v23, %v87_v24  ;;  %v283_v23 = vld [vmem:[#allocation4 + $0x690] sm:$0xff] }
  0xf2   :  { %2674 = vmatpush2.bf16.msra.mxu1 %v3972_v29  ;;  %2634 = vmatprep.subr.bf16.mxu0 %v3837_v30  ;;  %v3783_v29 = vcombine.high %v211_v25, %v215_v26  ;;  %v75_v30 = vld [vmem:[#allocation4 + $0x10] sm:$0xff]  ;;  %v3862_v26 = vcombine.low %v291_v12, %v295_v13 }
  0xf3   :  { %2675 = vmatprep.subr.bf16.mxu1 %v3965_v31  ;;  %v79_v31 = vld [vmem:[#allocation4 + $0x30] sm:$0xff] }
  0xf4   :  { %v3646_v42 = vcombine.low %v75_v30, %v79_v31  ;;  %v287_v24 = vld [vmem:[#allocation4 + $0x6b0] sm:$0xff] }
  0xf5   :  { %2635 = vmatpush2.bf16.msra.mxu0 %v3836_v37  ;;  %v3647_v37 = vcombine.high %v75_v30, %v79_v31  ;;  %v275_v30 = vld [vmem:[#allocation4 + $0x650] sm:$0xff] }
  0xf6   :  { %2676 = vmatpush2.bf16.msra.mxu1 %v3964_v38  ;;  %2686 = vmatprep.subr.bf16.mxu0 %v3703_v39  ;;  %v3775_v38 = vcombine.high %v203_v33, %v207_v34  ;;  %v195_v39 = vld [vmem:[#allocation4 + $0x3d0] sm:$0xff]  ;;  %v459_v34 = vlaneseq }
  0xf7   :  { %2727 = vmatprep.subr.bf16.mxu1 %v3831_v40  ;;  %v199_v40 = vld [vmem:[#allocation4 + $0x3f0] sm:$0xff] }
  0xf8   :  { %2637 = vmatmul.mubr.bf16.vlgmr.msra.gmra.mxu0 %v4412_v20  ;;  %v3766_v50 = vcombine.low %v195_v39, %v199_v40  ;;  %v279_v31 = vld [vmem:[#allocation4 + $0x670] sm:$0xff] }
  0xf9   :  { %2678 = vmatmul.mubr.bf16.vlgmr.msra.gmra.mxu1 %v4424_v32  ;;  %2687 = vmatpush1.bf16.msra.mxu0 %v3702_v44  ;;  %v3767_v44 = vcombine.high %v195_v39, %v199_v40  ;;  %v143_v39 = vld [vmem:[#allocation4 + $0x230] sm:$0xff] }
  0xfa   :  { %2728 = vmatpush1.bf16.msra.mxu1 %v3830_v45  ;;  %2688 = vmatprep.subr.bf16.mxu0 %v3695_v46  ;;  %v3895_v45 = vcombine.high %v323_v41, %v327_v19  ;;  %v187_v46 = vld [vmem:[#allocation4 + $0x390] sm:$0xff] }
  0xfb   :  { %2729 = vmatprep.subr.bf16.mxu1 %v3823_v47  ;;  %2718 = vmatprep.mubr.bf16.mxu0 %v4396_v58  ;;  %v191_v47 = vld [vmem:[#allocation4 + $0x3b0] sm:$0xff] }
  0xfc   :  { %2759 = vmatprep.mubr.bf16.mxu1 %v4400_v59  ;;  %v3758_v62 = vcombine.low %v187_v46, %v191_v47  ;;  %v267_v40 = vld [vmem:[#allocation4 + $0x610] sm:$0xff] }
  0xfd   :  { %2689 = vmatpush1.bf16.msra.mxu0 %v3694_v52  ;;  %v3759_v52 = vcombine.high %v187_v46, %v191_v47  ;;  %v271_v41 = vld [vmem:[#allocation4 + $0x630] sm:$0xff] }
  0xfe   :  { %2730 = vmatpush1.bf16.msra.mxu1 %v3822_v55  ;;  %2690 = vmatprep.subr.bf16.mxu0 %v3687_v56  ;;  %v3887_v55 = vcombine.high %v315_v48, %v319_v49  ;;  %v179_v56 = vld [vmem:[#allocation4 + $0x350] sm:$0xff]  ;;  %v132_v48 = vld [vmem:[#allocation4 + $0x1d8] sm:$0xff] }
  0xff   :  { %2731 = vmatprep.subr.bf16.mxu1 %v3815_v57  ;;  %v183_v57 = vld [vmem:[#allocation4 + $0x370] sm:$0xff]  ;;  %v136_v49 = vld [vmem:[#allocation4 + $0x1f8] sm:$0xff] }
 0x100   :  { %v3750_v6 = vcombine.low %v179_v56, %v183_v57  ;;  %v387_v46 = vld [vmem:[#allocation4 + $0x9d0] sm:$0xff] }
 0x101   :  { %2691 = vmatpush1.bf16.msra.mxu0 %v3686_v0  ;;  %v3751_v0 = vcombine.high %v179_v56, %v183_v57  ;;  %v391_v47 = vld [vmem:[#allocation4 + $0x9f0] sm:$0xff]  ;;  %v3705_v57 = vcombine.high %v132_v48, %v136_v49 }
 0x102   :  { %2732 = vmatpush1.bf16.msra.mxu1 %v3814_v1  ;;  %2692 = vmatprep.subr.bf16.mxu0 %v3679_v2  ;;  %v3879_v1 = vcombine.high %v307_v60, %v311_v61  ;;  %v171_v2 = vld [vmem:[#allocation4 + $0x310] sm:$0xff]  ;;  %v3959_v56 = vcombine.high %v387_v46, %v391_v47 }
 0x103   :  { %2733 = vmatprep.subr.bf16.mxu1 %v3807_v3  ;;  %v175_v3 = vld [vmem:[#allocation4 + $0x330] sm:$0xff] }
 0x104   :  { %v3742_v14 = vcombine.low %v171_v2, %v175_v3  ;;  %v379_v61 = vld [vmem:[#allocation4 + $0x990] sm:$0xff] }
 0x105   :  { %2693 = vmatpush1.bf16.msra.mxu0 %v3678_v8  ;;  %v3743_v8 = vcombine.high %v171_v2, %v175_v3  ;;  %v3958_v2 = vcombine.low %v387_v46, %v391_v47  ;;  %v3704_v3 = vcombine.low %v132_v48, %v136_v49  ;;  %v351_v46 = vld [vmem:[#allocation4 + $0x8b0] sm:$0xff]  ;;  %v92_v47 = vld [vmem:[#allocation4 + $0x98] sm:$0xff] }
 0x106   :  { %2734 = vmatpush1.bf16.msra.mxu1 %v3806_v9  ;;  %2694 = vmatprep.subr.bf16.mxu0 %v3671_v10  ;;  %v3871_v9 = vcombine.high %v299_v4, %v303_v5  ;;  %v163_v10 = vld [vmem:[#allocation4 + $0x2d0] sm:$0xff]  ;;  %v96_v48 = vld [vmem:[#allocation4 + $0xb8] sm:$0xff] }
 0x107   :  { %2735 = vmatprep.subr.bf16.mxu1 %v3799_v11  ;;  %v167_v11 = vld [vmem:[#allocation4 + $0x2f0] sm:$0xff] }
 0x108   :  { %v3734_v25 = vcombine.low %v163_v10, %v167_v11 }
 0x109   :  { %2695 = vmatpush1.bf16.msra.mxu0 %v3670_v17  ;;  %v3735_v17 = vcombine.high %v163_v10, %v167_v11  ;;  %v116_v10 = vld [vmem:[#allocation4 + $0x158] sm:$0xff] }
 0x10a   :  { %2736 = vmatpush1.bf16.msra.mxu1 %v3798_v18  ;;  %2696 = vmatprep.subr.bf16.mxu0 %v3663_v21  ;;  %v3863_v18 = vcombine.high %v291_v12, %v295_v13  ;;  %v155_v21 = vld [vmem:[#allocation4 + $0x290] sm:$0xff]  ;;  %v120_v11 = vld [vmem:[#allocation4 + $0x178] sm:$0xff] }
 0x10b   :  { %2737 = vmatprep.subr.bf16.mxu1 %v3791_v22  ;;  %v159_v22 = vld [vmem:[#allocation4 + $0x2b0] sm:$0xff] }
 0x10c   :  { %v3726_v33 = vcombine.low %v155_v21, %v159_v22 }
 0x10d   :  { %2697 = vmatpush1.bf16.msra.mxu0 %v3662_v53  ;;  %v3727_v53 = vcombine.high %v155_v21, %v159_v22 }
 0x10e   :  { %2738 = vmatpush1.bf16.msra.mxu1 %v3790_v27  ;;  %2698 = vmatprep.subr.bf16.mxu0 %v3655_v54  ;;  %v3855_v27 = vcombine.high %v283_v23, %v287_v24  ;;  %v147_v54 = vld [vmem:[#allocation4 + $0x250] sm:$0xff] }
 0x10f   :  { %2739 = vmatprep.subr.bf16.mxu1 %v3783_v29  ;;  %v151_v29 = vld [vmem:[#allocation4 + $0x270] sm:$0xff] }
 0x110   :  { %v3718_v19 = vcombine.low %v147_v54, %v151_v29 }
 0x111   :  { %2699 = vmatpush1.bf16.msra.mxu0 %v3654_v35  ;;  %v3854_v35 = vcombine.low %v283_v23, %v287_v24  ;;  %v3689_v24 = vcombine.high %v116_v10, %v120_v11 }
 0x112   :  { %2740 = vmatpush1.bf16.msra.mxu1 %v3782_v36  ;;  %2700 = vmatprep.subr.bf16.mxu0 %v3647_v37  ;;  %v3719_v36 = vcombine.high %v147_v54, %v151_v29  ;;  %v3847_v37 = vcombine.high %v275_v30, %v279_v31  ;;  %v112_v54 = vld [vmem:[#allocation4 + $0x138] sm:$0xff] }
 0x113   :  { %2741 = vmatprep.subr.bf16.mxu1 %v3775_v38  ;;  %v139_v38 = vld [vmem:[#allocation4 + $0x210] sm:$0xff] }
 0x115   :  { %2701 = vmatpush1.bf16.msra.mxu0 %v3646_v42  ;;  %v4434_v42 = vshrl.u32 %v459_v34, 7  ;;  %v3688_v34 = vcombine.low %v116_v10, %v120_v11  ;;  %v451_v10 = vld [vmem:[#allocation4 + $0xbd0] sm:$0xff] }
 0x116   :  { %2742 = vmatpush1.bf16.msra.mxu1 %v3774_v43  ;;  %2702 = vmatprep.subr.bf16.mxu0 %v3767_v44  ;;  %v3846_v43 = vcombine.low %v275_v30, %v279_v31  ;;  %v3711_v44 = vcombine.high %v139_v38, %v143_v39  ;;  %v455_v11 = vld [vmem:[#allocation4 + $0xbf0] sm:$0xff] }
 0x117   :  { %2743 = vmatprep.subr.bf16.mxu1 %v3895_v45  ;;  %v3839_v45 = vcombine.high %v267_v40, %v271_v41  ;;  %v465_v60 = vsub.s32 1, %v4434_v42 }
 0x119   :  { %2703 = vmatpush2.bf16.msra.mxu0 %v3766_v50  ;;  %v3710_v50 = vcombine.low %v139_v38, %v143_v39  ;;  %v355_v38 = vld [vmem:[#allocation4 + $0x8d0] sm:$0xff] }
 0x11a   :  { %2744 = vmatpush2.bf16.msra.mxu1 %v3894_v51  ;;  %2704 = vmatprep.subr.bf16.mxu0 %v3759_v52  ;;  %v461_v51 = vsub.s32 0, %v4434_v42  ;;  %v3838_v52 = vcombine.low %v267_v40, %v271_v41  ;;  %v359_v39 = vld [vmem:[#allocation4 + $0x8f0] sm:$0xff]  ;;  %v100_v40 = vld [vmem:[#allocation4 + $0xd8] sm:$0xff] }
 0x11b   :  { %2745 = vmatprep.subr.bf16.mxu1 %v3887_v55  ;;  %v4437_v55 = vld [vmem:[#allocation6] sm:$0xff]  ;;  %v104_v41 = vld [vmem:[#allocation4 + $0xf8] sm:$0xff]  ;;  %v3926_v49 = vcombine.low %v355_v38, %v359_v39 }
 0x11c   :  { %v466_v5 = vrot.slane %v4437_v55, %v465_v60  ;;  %v84_v60 = vld [vmem:[#allocation4 + $0x58] sm:$0xff] }
 0x11d   :  { %2705 = vmatpush2.bf16.msra.mxu0 %v3758_v62  ;;  %v383_v62 = vld [vmem:[#allocation4 + $0x9b0] sm:$0xff] }
 0x11e   :  { %2746 = vmatpush2.bf16.msra.mxu1 %v3886_v63  ;;  %2706 = vmatprep.subr.bf16.mxu0 %v3751_v0  ;;  %v124_v63 = vld [vmem:[#allocation4 + $0x198] sm:$0xff]  ;;  %v3951_v4 = vcombine.high %v379_v61, %v383_v62 }
 0x11f   :  { %2747 = vmatprep.subr.bf16.mxu1 %v3879_v1  ;;  %v128_v0 = vld [vmem:[#allocation4 + $0x1b8] sm:$0xff]  ;;  %v462_v1 = vrot.slane %v4437_v55, %v461_v51 }
 0x121   :  { %2707 = vmatpush2.bf16.msra.mxu0 %v3750_v6  ;;  %v3697_v6 = vcombine.high %v124_v63, %v128_v0 }
 0x122   :  { %2748 = vmatpush2.bf16.msra.mxu1 %v3878_v7  ;;  %2708 = vmatprep.subr.bf16.mxu0 %v3743_v8  ;;  %v371_v7 = vld [vmem:[#allocation4 + $0x950] sm:$0xff] }
 0x123   :  { %2749 = vmatprep.subr.bf16.mxu1 %v3871_v9  ;;  %v375_v8 = vld [vmem:[#allocation4 + $0x970] sm:$0xff] }
 0x124   :  { %v3942_v31 = vcombine.low %v371_v7, %v375_v8 }
 0x125   :  { %2709 = vmatpush2.bf16.msra.mxu0 %v3742_v14  ;;  %v3950_v14 = vcombine.low %v379_v61, %v383_v62  ;;  %v88_v61 = vld [vmem:[#allocation4 + $0x78] sm:$0xff] }
 0x126   :  { %2750 = vmatpush2.bf16.msra.mxu1 %v3870_v15  ;;  %2710 = vmatprep.subr.bf16.mxu0 %v3735_v17  ;;  %v3696_v17 = vcombine.low %v124_v63, %v128_v0  ;;  %v3664_v63 = vcombine.low %v92_v47, %v96_v48 }
 0x127   :  { %2751 = vmatprep.subr.bf16.mxu1 %v3863_v18  ;;  %v3943_v18 = vcombine.high %v371_v7, %v375_v8  ;;  %v3656_v7 = vcombine.low %v84_v60, %v88_v61 }
 0x129   :  { %2711 = vmatpush2.bf16.msra.mxu0 %v3734_v25  ;;  %v363_v25 = vld [vmem:[#allocation4 + $0x910] sm:$0xff] }
 0x12a   :  { %2752 = vmatpush2.bf16.msra.mxu1 %v3862_v26  ;;  %2712 = vmatprep.subr.bf16.mxu0 %v3727_v53  ;;  %v367_v26 = vld [vmem:[#allocation4 + $0x930] sm:$0xff] }
 0x12b   :  { %2753 = vmatprep.subr.bf16.mxu1 %v3855_v27  ;;  %v108_v27 = vld [vmem:[#allocation4 + $0x118] sm:$0xff] }
 0x12d   :  { %2713 = vmatpush2.bf16.msra.mxu0 %v3726_v33 }
 0x12e   :  { %2754 = vmatpush2.bf16.msra.mxu1 %v3854_v35  ;;  %2714 = vmatprep.subr.bf16.mxu0 %v3719_v36  ;;  %v3935_v35 = vcombine.high %v363_v25, %v367_v26 }
 0x12f   :  { %2755 = vmatprep.subr.bf16.mxu1 %v3847_v37  ;;  %v3681_v37 = vcombine.high %v108_v27, %v112_v54 }
 0x131   :  { %2715 = vmatpush2.bf16.msra.mxu0 %v3718_v19  ;;  %v3934_v19 = vcombine.low %v363_v25, %v367_v26  ;;  %v192_v25 = vld [vmem:[#allocation4 + $0x3b8] sm:$0xff]  ;;  %v4022_v26 = vcombine.low %v451_v10, %v455_v11 }
 0x132   :  { %2756 = vmatpush2.bf16.msra.mxu1 %v3846_v43  ;;  %2716 = vmatprep.subr.bf16.mxu0 %v3711_v44  ;;  %v3927_v43 = vcombine.high %v355_v38, %v359_v39  ;;  %v3673_v44 = vcombine.high %v100_v40, %v104_v41  ;;  %v427_v39 = vld [vmem:[#allocation4 + $0xb10] sm:$0xff] }
 0x133   :  { %2757 = vmatprep.subr.bf16.mxu1 %v3839_v45  ;;  %v347_v45 = vld [vmem:[#allocation4 + $0x890] sm:$0xff] }
 0x134   :  { %v3919_v51 = vcombine.high %v347_v45, %v351_v46  ;;  %v3918_v62 = vcombine.low %v347_v45, %v351_v46  ;;  %v419_v46 = vld [vmem:[#allocation4 + $0xad0] sm:$0xff] }
 0x135   :  { %2717 = vmatpush2.bf16.msra.mxu0 %v3710_v50  ;;  %v3672_v50 = vcombine.low %v100_v40, %v104_v41  ;;  %v431_v40 = vld [vmem:[#allocation4 + $0xb30] sm:$0xff]  ;;  %v172_v41 = vld [vmem:[#allocation4 + $0x318] sm:$0xff] }
 0x136   :  { %2758 = vmatpush2.bf16.msra.mxu1 %v3838_v52  ;;  %2768 = vmatprep.subr.bf16.mxu0 %v3959_v56  ;;  %v3665_v52 = vcombine.high %v92_v47, %v96_v48  ;;  %v339_v56 = vld [vmem:[#allocation4 + $0x850] sm:$0xff]  ;;  %v164_v48 = vld [vmem:[#allocation4 + $0x2d8] sm:$0xff] }
 0x137   :  { %2809 = vmatprep.subr.bf16.mxu1 %v3705_v57  ;;  %v343_v57 = vld [vmem:[#allocation4 + $0x870] sm:$0xff] }
 0x138   :  { %v2474_v9 = vpop.f32.mrf.mxu0  ;;  %2719 = vmatmul.mubr.bf16.vlgmr.msra.gmra.mxu0 %v4406_v16  ;;  %v3911_v0 = vcombine.high %v339_v56, %v343_v57  ;;  %v423_v47 = vld [vmem:[#allocation4 + $0xaf0] sm:$0xff] }
 0x139   :  { %v2475_v12 = vadd.f32 %v2474_v9, %v462_v1  ;;  %v2515_v13 = vpop.f32.mrf.mxu1  ;;  %2760 = vmatmul.mubr.bf16.vlgmr.msra.gmra.mxu1 %v4412_v20  ;;  %2769 = vmatpush1.bf16.msra.mxu0 %v3958_v2  ;;  %v3657_v1 = vcombine.high %v84_v60, %v88_v61  ;;  %v331_v2 = vld [vmem:[#allocation4 + $0x810] sm:$0xff]  ;;  %v156_v61 = vld [vmem:[#allocation4 + $0x298] sm:$0xff] }
 0x13a   :  { %2810 = vmatpush1.bf16.msra.mxu1 %v3704_v3  ;;  %v2476_v15 = vpop.f32.mrf.mxu0  ;;  %2770 = vmatprep.subr.bf16.mxu0 %v3951_v4  ;;  %v335_v3 = vld [vmem:[#allocation4 + $0x830] sm:$0xff]  ;;  %v76_v4 = vld [vmem:[#allocation4 + $0x18] sm:$0xff] }
 0x13b   :  { %v4444_v21 = vadd.f32 %v2515_v13, %v2475_v12  ;;  %v2477_v22 = vadd.f32 %v2476_v15, %v466_v5  ;;  %v2517_v23 = vpop.f32.mrf.mxu1  ;;  %2811 = vmatprep.subr.bf16.mxu1 %v3697_v6  ;;  %2800 = vmatprep.mubr.bf16.mxu0 %v4416_v28  ;;  %v80_v5 = vld [vmem:[#allocation4 + $0x38] sm:$0xff]  ;;  %v3910_v6 = vcombine.low %v339_v56, %v343_v57  ;;  %v411_v57 = vld [vmem:[#allocation4 + $0xa90] sm:$0xff] }
 0x13c   :  { %v2478_v53 = vpop.f32.mrf.mxu0  ;;  %2841 = vmatprep.mubr.bf16.mxu1 %v4396_v58  ;;  %v3680_v58 = vcombine.low %v108_v27, %v112_v54  ;;  %v3903_v8 = vcombine.high %v331_v2, %v335_v3  ;;  %v3649_v9 = vcombine.high %v76_v4, %v80_v5  ;;  %v196_v12 = vld [vmem:[#allocation4 + $0x3d8] sm:$0xff]  ;;  %v3648_v15 = vcombine.low %v76_v4, %v80_v5  ;;  %v415_v60 = vld [vmem:[#allocation4 + $0xab0] sm:$0xff] }
 0x13d   :  { %v4448_v29 = vadd.f32 %v2517_v23, %v2477_v22  ;;  %v2519_v30 = vpop.f32.mrf.mxu1  ;;  %2771 = vmatpush1.bf16.msra.mxu0 %v3950_v14  ;;  %v200_v13 = vld [vmem:[#allocation4 + $0x3f8] sm:$0xff]  ;;  %v3902_v14 = vcombine.low %v331_v2, %v335_v3  ;;  %v443_v22 = vld [vmem:[#allocation4 + $0xb90] sm:$0xff] }
 0x13e   :  { %2812 = vmatpush1.bf16.msra.mxu1 %v3696_v17  ;;  %v2479_v33 = vpop.f32.mrf.mxu0  ;;  %2772 = vmatprep.subr.bf16.mxu0 %v3943_v18  ;;  %v4023_v17 = vcombine.high %v451_v10, %v455_v11  ;;  %v3769_v18 = vcombine.high %v196_v12, %v200_v13  ;;  %v447_v23 = vld [vmem:[#allocation4 + $0xbb0] sm:$0xff]  ;;  %v3768_v53 = vcombine.low %v196_v12, %v200_v13  ;;  %v148_v5 = vld [vmem:[#allocation4 + $0x258] sm:$0xff] }
 0x13f   :  { %v2520_v36 = vpop.f32.mrf.mxu1  ;;  %2813 = vmatprep.subr.bf16.mxu1 %v3689_v24  ;;  %v188_v24 = vld [vmem:[#allocation4 + $0x398] sm:$0xff]  ;;  %v4015_v27 = vcombine.high %v443_v22, %v447_v23  ;;  %v435_v30 = vld [vmem:[#allocation4 + $0xb50] sm:$0xff] }
 0x140   :  { %v3761_v54 = vcombine.high %v188_v24, %v192_v25  ;;  %v180_v33 = vld [vmem:[#allocation4 + $0x358] sm:$0xff]  ;;  %v3760_v36 = vcombine.low %v188_v24, %v192_v25  ;;  %v403_v3 = vld [vmem:[#allocation4 + $0xa50] sm:$0xff] }
 0x141   :  { %2773 = vmatpush1.bf16.msra.mxu0 %v3942_v31  ;;  %v439_v31 = vld [vmem:[#allocation4 + $0xb70] sm:$0xff]  ;;  %v140_v13 = vld [vmem:[#allocation4 + $0x218] sm:$0xff] }
 0x142   :  { %2814 = vmatpush1.bf16.msra.mxu1 %v3688_v34  ;;  %2774 = vmatprep.subr.bf16.mxu0 %v3935_v35  ;;  %v184_v34 = vld [vmem:[#allocation4 + $0x378] sm:$0xff]  ;;  %v4014_v35 = vcombine.low %v443_v22, %v447_v23  ;;  %v407_v4 = vld [vmem:[#allocation4 + $0xa70] sm:$0xff] }
 0x143   :  { %2815 = vmatprep.subr.bf16.mxu1 %v3681_v37  ;;  %v4007_v37 = vcombine.high %v435_v30, %v439_v31  ;;  %v3753_v38 = vcombine.high %v180_v33, %v184_v34  ;;  %v395_v11 = vld [vmem:[#allocation4 + $0xa10] sm:$0xff]  ;;  %v260_v23 = vld [vmem:[#allocation4 + $0x5d8] sm:$0xff] }
 0x144   :  { %v399_v12 = vld [vmem:[#allocation4 + $0xa30] sm:$0xff]  ;;  %v264_v24 = vld [vmem:[#allocation4 + $0x5f8] sm:$0xff] }
 0x145   :  { %2775 = vmatpush1.bf16.msra.mxu0 %v3934_v19  ;;  %v176_v19 = vld [vmem:[#allocation4 + $0x338] sm:$0xff] }
 0x146   :  { %2816 = vmatpush1.bf16.msra.mxu1 %v3680_v58  ;;  %2776 = vmatprep.subr.bf16.mxu0 %v3927_v43  ;;  %v4006_v58 = vcombine.low %v435_v30, %v439_v31  ;;  %v3752_v43 = vcombine.low %v180_v33, %v184_v34  ;;  %v3745_v45 = vcombine.high %v172_v41, %v176_v19  ;;  %v388_v25 = vld [vmem:[#allocation4 + $0x9d8] sm:$0xff] }
 0x147   :  { %2817 = vmatprep.subr.bf16.mxu1 %v3673_v44  ;;  %v3999_v44 = vcombine.high %v427_v39, %v431_v40  ;;  %v252_v31 = vld [vmem:[#allocation4 + $0x598] sm:$0xff] }
 0x148   :  { %v256_v33 = vld [vmem:[#allocation4 + $0x5b8] sm:$0xff] }
 0x149   :  { %2777 = vmatpush1.bf16.msra.mxu0 %v3926_v49  ;;  %v168_v49 = vld [vmem:[#allocation4 + $0x2f8] sm:$0xff] }
 0x14a   :  { %2818 = vmatpush1.bf16.msra.mxu1 %v3672_v50  ;;  %2778 = vmatprep.subr.bf16.mxu0 %v3919_v51  ;;  %v3998_v50 = vcombine.low %v427_v39, %v431_v40  ;;  %v3744_v51 = vcombine.low %v172_v41, %v176_v19  ;;  %v3737_v56 = vcombine.high %v164_v48, %v168_v49  ;;  %v380_v34 = vld [vmem:[#allocation4 + $0x998] sm:$0xff] }
 0x14b   :  { %2819 = vmatprep.subr.bf16.mxu1 %v3665_v52  ;;  %v3991_v52 = vcombine.high %v419_v46, %v423_v47  ;;  %v244_v40 = vld [vmem:[#allocation4 + $0x558] sm:$0xff] }
 0x14c   :  { %v248_v41 = vld [vmem:[#allocation4 + $0x578] sm:$0xff] }
 0x14d   :  { %2779 = vmatpush1.bf16.msra.mxu0 %v3918_v62  ;;  %v160_v62 = vld [vmem:[#allocation4 + $0x2b8] sm:$0xff] }
 0x14e   :  { %2820 = vmatpush1.bf16.msra.mxu1 %v3664_v63  ;;  %2780 = vmatprep.subr.bf16.mxu0 %v3911_v0  ;;  %v3990_v63 = vcombine.low %v419_v46, %v423_v47  ;;  %v3736_v0 = vcombine.low %v164_v48, %v168_v49  ;;  %v3729_v2 = vcombine.high %v156_v61, %v160_v62 }
 0x14f   :  { %2821 = vmatprep.subr.bf16.mxu1 %v3657_v1  ;;  %v3983_v1 = vcombine.high %v411_v57, %v415_v60  ;;  %v3824_v46 = vcombine.low %v252_v31, %v256_v33  ;;  %v3817_v49 = vcombine.high %v244_v40, %v248_v41 }
 0x151   :  { %2781 = vmatpush1.bf16.msra.mxu0 %v3910_v6  ;;  %v152_v6 = vld [vmem:[#allocation4 + $0x278] sm:$0xff] }
 0x152   :  { %2822 = vmatpush1.bf16.msra.mxu1 %v3656_v7  ;;  %2782 = vmatprep.subr.bf16.mxu0 %v3903_v8  ;;  %v3982_v7 = vcombine.low %v411_v57, %v415_v60  ;;  %v3728_v8 = vcombine.low %v156_v61, %v160_v62  ;;  %v3721_v10 = vcombine.high %v148_v5, %v152_v6  ;;  %v364_v57 = vld [vmem:[#allocation4 + $0x918] sm:$0xff] }
 0x153   :  { %2823 = vmatprep.subr.bf16.mxu1 %v3649_v9  ;;  %v3975_v9 = vcombine.high %v403_v3, %v407_v4  ;;  %v368_v60 = vld [vmem:[#allocation4 + $0x938] sm:$0xff]  ;;  %v3816_v61 = vcombine.low %v244_v40, %v248_v41 }
 0x154   :  { %v452_v40 = vld [vmem:[#allocation4 + $0xbd8] sm:$0xff] }
 0x155   :  { %2783 = vmatpush1.bf16.msra.mxu0 %v3902_v14  ;;  %v144_v14 = vld [vmem:[#allocation4 + $0x238] sm:$0xff] }
 0x156   :  { %2824 = vmatpush1.bf16.msra.mxu1 %v3648_v15  ;;  %2784 = vmatprep.subr.bf16.mxu0 %v4023_v17  ;;  %v3974_v15 = vcombine.low %v403_v3, %v407_v4  ;;  %v3720_v17 = vcombine.low %v148_v5, %v152_v6  ;;  %v3713_v22 = vcombine.high %v140_v13, %v144_v14  ;;  %v228_v3 = vld [vmem:[#allocation4 + $0x4d8] sm:$0xff] }
 0x157   :  { %2825 = vmatprep.subr.bf16.mxu1 %v3769_v18  ;;  %v3967_v18 = vcombine.high %v395_v11, %v399_v12  ;;  %v232_v4 = vld [vmem:[#allocation4 + $0x4f8] sm:$0xff] }
 0x158   :  { %v356_v5 = vld [vmem:[#allocation4 + $0x8d8] sm:$0xff] }
 0x159   :  { %2785 = vmatpush2.bf16.msra.mxu0 %v4022_v26  ;;  %v392_v26 = vld [vmem:[#allocation4 + $0x9f8] sm:$0xff] }
 0x15a   :  { %2826 = vmatpush2.bf16.msra.mxu1 %v3768_v53  ;;  %2786 = vmatprep.subr.bf16.mxu0 %v4015_v27  ;;  %v3966_v53 = vcombine.low %v395_v11, %v399_v12  ;;  %v3712_v27 = vcombine.low %v140_v13, %v144_v14  ;;  %v3961_v30 = vcombine.high %v388_v25, %v392_v26  ;;  %v348_v11 = vld [vmem:[#allocation4 + $0x898] sm:$0xff] }
 0x15b   :  { %2827 = vmatprep.subr.bf16.mxu1 %v3761_v54  ;;  %v3833_v54 = vcombine.high %v260_v23, %v264_v24  ;;  %v352_v12 = vld [vmem:[#allocation4 + $0x8b8] sm:$0xff]  ;;  %v3800_v13 = vcombine.low %v228_v3, %v232_v4 }
 0x15c   :  { %v456_v41 = vld [vmem:[#allocation4 + $0xbf8] sm:$0xff] }
 0x15d   :  { %2787 = vmatpush2.bf16.msra.mxu0 %v4014_v35  ;;  %v384_v35 = vld [vmem:[#allocation4 + $0x9b8] sm:$0xff] }
 0x15e   :  { %2828 = vmatpush2.bf16.msra.mxu1 %v3760_v36  ;;  %2788 = vmatprep.subr.bf16.mxu0 %v4007_v37  ;;  %v3832_v36 = vcombine.low %v260_v23, %v264_v24  ;;  %v3960_v37 = vcombine.low %v388_v25, %v392_v26  ;;  %v3953_v39 = vcombine.high %v380_v34, %v384_v35  ;;  %v340_v23 = vld [vmem:[#allocation4 + $0x858] sm:$0xff] }
 0x15f   :  { %2829 = vmatprep.subr.bf16.mxu1 %v3753_v38  ;;  %v3825_v38 = vcombine.high %v252_v31, %v256_v33  ;;  %v3952_v48 = vcombine.low %v380_v34, %v384_v35  ;;  %v344_v24 = vld [vmem:[#allocation4 + $0x878] sm:$0xff]  ;;  %v3920_v26 = vcombine.low %v348_v11, %v352_v12 }
 0x160   :  { %v332_v31 = vld [vmem:[#allocation4 + $0x818] sm:$0xff]  ;;  %v3912_v35 = vcombine.low %v340_v23, %v344_v24 }
 0x161   :  { %2789 = vmatpush2.bf16.msra.mxu0 %v4006_v58  ;;  %v372_v58 = vld [vmem:[#allocation4 + $0x958] sm:$0xff] }
 0x162   :  { %2830 = vmatpush2.bf16.msra.mxu1 %v3752_v43  ;;  %2790 = vmatprep.subr.bf16.mxu0 %v3999_v44  ;;  %v376_v43 = vld [vmem:[#allocation4 + $0x978] sm:$0xff] }
 0x163   :  { %2831 = vmatprep.subr.bf16.mxu1 %v3745_v45  ;;  %v336_v33 = vld [vmem:[#allocation4 + $0x838] sm:$0xff] }
 0x165   :  { %2791 = vmatpush2.bf16.msra.mxu0 %v3998_v50 }
 0x166   :  { %2832 = vmatpush2.bf16.msra.mxu1 %v3744_v51  ;;  %2792 = vmatprep.subr.bf16.mxu0 %v3991_v52  ;;  %v3945_v51 = vcombine.high %v372_v58, %v376_v43  ;;  %v236_v52 = vld [vmem:[#allocation4 + $0x518] sm:$0xff] }
 0x167   :  { %2833 = vmatprep.subr.bf16.mxu1 %v3737_v56  ;;  %v240_v56 = vld [vmem:[#allocation4 + $0x538] sm:$0xff] }
 0x168   :  { %v3808_v6 = vcombine.low %v236_v52, %v240_v56 }
 0x169   :  { %2793 = vmatpush2.bf16.msra.mxu0 %v3990_v63  ;;  %v3944_v63 = vcombine.low %v372_v58, %v376_v43  ;;  %v3904_v58 = vcombine.low %v332_v31, %v336_v33 }
 0x16a   :  { %2834 = vmatpush2.bf16.msra.mxu1 %v3736_v0  ;;  %2794 = vmatprep.subr.bf16.mxu0 %v3983_v1  ;;  %v3809_v0 = vcombine.high %v236_v52, %v240_v56  ;;  %v448_v52 = vld [vmem:[#allocation4 + $0xbb8] sm:$0xff] }
 0x16b   :  { %2835 = vmatprep.subr.bf16.mxu1 %v3729_v2  ;;  %v3937_v2 = vcombine.high %v364_v57, %v368_v60 }
 0x16d   :  { %2795 = vmatpush2.bf16.msra.mxu0 %v3982_v7  ;;  %v3801_v7 = vcombine.high %v228_v3, %v232_v4  ;;  %v300_v4 = vld [vmem:[#allocation4 + $0x718] sm:$0xff] }
 0x16e   :  { %2836 = vmatpush2.bf16.msra.mxu1 %v3728_v8  ;;  %2796 = vmatprep.subr.bf16.mxu0 %v3975_v9  ;;  %v220_v9 = vld [vmem:[#allocation4 + $0x498] sm:$0xff] }
 0x16f   :  { %2837 = vmatprep.subr.bf16.mxu1 %v3721_v10  ;;  %v224_v10 = vld [vmem:[#allocation4 + $0x4b8] sm:$0xff] }
 0x170   :  { %v3792_v25 = vcombine.low %v220_v9, %v224_v10 }
 0x171   :  { %2797 = vmatpush2.bf16.msra.mxu0 %v3974_v15  ;;  %v3793_v15 = vcombine.high %v220_v9, %v224_v10  ;;  %v292_v10 = vld [vmem:[#allocation4 + $0x6d8] sm:$0xff] }
 0x172   :  { %2838 = vmatpush2.bf16.msra.mxu1 %v3720_v17  ;;  %2798 = vmatprep.subr.bf16.mxu0 %v3967_v18  ;;  %v3921_v17 = vcombine.high %v348_v11, %v352_v12  ;;  %v212_v18 = vld [vmem:[#allocation4 + $0x458] sm:$0xff] }
 0x173   :  { %2839 = vmatprep.subr.bf16.mxu1 %v3713_v22  ;;  %v216_v22 = vld [vmem:[#allocation4 + $0x478] sm:$0xff] }
 0x174   :  { %v3784_v34 = vcombine.low %v212_v18, %v216_v22  ;;  %v296_v11 = vld [vmem:[#allocation4 + $0x6f8] sm:$0xff] }
 0x175   :  { %2799 = vmatpush2.bf16.msra.mxu0 %v3966_v53  ;;  %v3785_v53 = vcombine.high %v212_v18, %v216_v22  ;;  %v420_v12 = vld [vmem:[#allocation4 + $0xad8] sm:$0xff] }
 0x176   :  { %2840 = vmatpush2.bf16.msra.mxu1 %v3712_v27  ;;  %2850 = vmatprep.subr.bf16.mxu0 %v3833_v54  ;;  %v3913_v27 = vcombine.high %v340_v23, %v344_v24  ;;  %v204_v54 = vld [vmem:[#allocation4 + $0x418] sm:$0xff] }
 0x177   :  { %2891 = vmatprep.subr.bf16.mxu1 %v3961_v30  ;;  %v208_v30 = vld [vmem:[#allocation4 + $0x438] sm:$0xff] }
 0x178   :  { %v2556_v19 = vpop.f32.mrf.mxu0  ;;  %2801 = vmatmul.mubr.bf16.vlgmr.msra.gmra.mxu0 %v4424_v32  ;;  %v284_v22 = vld [vmem:[#allocation4 + $0x698] sm:$0xff] }
 0x179   :  { %v4452_v44 = vadd.f32 %v2556_v19, %v4444_v21  ;;  %v4454_v45 = vpop.f32.mrf.mxu1  ;;  %2842 = vmatmul.mubr.bf16.vlgmr.msra.gmra.mxu1 %v4406_v16  ;;  %2851 = vmatpush1.bf16.msra.mxu0 %v3832_v36  ;;  %v3777_v36 = vcombine.high %v204_v54, %v208_v30  ;;  %v3776_v19 = vcombine.low %v204_v54, %v208_v30  ;;  %v288_v23 = vld [vmem:[#allocation4 + $0x6b8] sm:$0xff] }
 0x17a   :  { %2892 = vmatpush1.bf16.msra.mxu1 %v3960_v37  ;;  %v4457_v47 = vpop.f32.mrf.mxu0  ;;  %2852 = vmatprep.subr.bf16.mxu0 %v3825_v38  ;;  %v3905_v37 = vcombine.high %v332_v31, %v336_v33  ;;  %v324_v38 = vld [vmem:[#allocation4 + $0x7d8] sm:$0xff] }
 0x17b   :  { %v4459_v50 = vpop.f32.mrf.mxu1  ;;  %2893 = vmatprep.subr.bf16.mxu1 %v3953_v39  ;;  %2882 = vmatprep.mubr.bf16.mxu0 %v4400_v59  ;;  %v360_v59 = vld [vmem:[#allocation4 + $0x8f8] sm:$0xff] }
 0x17c   :  { %v2560_v21 = vpop.f32.mrf.mxu0  ;;  %2923 = vmatprep.mubr.bf16.mxu1 %v4416_v28  ;;  %v3936_v28 = vcombine.low %v364_v57, %v368_v60  ;;  %v3929_v8 = vcombine.high %v356_v5, %v360_v59  ;;  %v3928_v14 = vcombine.low %v356_v5, %v360_v59  ;;  %v328_v39 = vld [vmem:[#allocation4 + $0x7f8] sm:$0xff] }
 0x17d   :  { %v2601_v16 = vpop.f32.mrf.mxu1  ;;  %2853 = vmatpush1.bf16.msra.mxu0 %v3824_v46  ;;  %v3897_v43 = vcombine.high %v324_v38, %v328_v39  ;;  %v4025_v46 = vcombine.high %v452_v40, %v456_v41  ;;  %v3896_v56 = vcombine.low %v324_v38, %v328_v39  ;;  %v4024_v21 = vcombine.low %v452_v40, %v456_v41  ;;  %v304_v5 = vld [vmem:[#allocation4 + $0x738] sm:$0xff] }
 0x17e   :  { %2894 = vmatpush1.bf16.msra.mxu1 %v3952_v48  ;;  %v2561_v62 = vpop.f32.mrf.mxu0  ;;  %2854 = vmatprep.subr.bf16.mxu0 %v3817_v49  ;;  %v316_v48 = vld [vmem:[#allocation4 + $0x798] sm:$0xff] }
 0x17f   :  { %v2602_v1 = vpop.f32.mrf.mxu1  ;;  %2895 = vmatprep.subr.bf16.mxu1 %v3945_v51  ;;  %v320_v49 = vld [vmem:[#allocation4 + $0x7b8] sm:$0xff] }
 0x180   :  { %v444_v51 = vld [vmem:[#allocation4 + $0xb98] sm:$0xff]  ;;  %v3889_v57 = vcombine.high %v316_v48, %v320_v49 }
 0x181   :  { %2855 = vmatpush1.bf16.msra.mxu0 %v3816_v61  ;;  %v4017_v60 = vcombine.high %v444_v51, %v448_v52  ;;  %v308_v16 = vld [vmem:[#allocation4 + $0x758] sm:$0xff]  ;;  %v4016_v1 = vcombine.low %v444_v51, %v448_v52  ;;  %v473_v51 = vsub.s32 3, %v4434_v42 }
 0x182   :  { %2896 = vmatpush1.bf16.msra.mxu1 %v3944_v63  ;;  %2856 = vmatprep.subr.bf16.mxu0 %v3809_v0  ;;  %v312_v61 = vld [vmem:[#allocation4 + $0x778] sm:$0xff]  ;;  %v3888_v0 = vcombine.low %v316_v48, %v320_v49  ;;  %v2559_v49 = vadd.f32 %v4457_v47, %v4448_v29  ;;  %v4193_v29 = vld [vmem:[%s4679_s3 + $0x38] sm:$0xff]  }
 0x183   :  { %2897 = vmatprep.subr.bf16.mxu1 %v3937_v2  ;;  %v436_v62 = vld [vmem:[#allocation4 + $0xb58] sm:$0xff]  ;;  %v3881_v2 = vcombine.high %v308_v16, %v312_v61  ;;  %v4194_v47 = vld [vmem:[%s4679_s3 + $0xb8] sm:$0xff]  }
 0x184   :  { %v440_v63 = vld [vmem:[#allocation4 + $0xb78] sm:$0xff] }
 0x185   :  { %2857 = vmatpush1.bf16.msra.mxu0 %v3808_v6  ;;  %v4009_v3 = vcombine.high %v436_v62, %v440_v63  ;;  %v428_v59 = vld [vmem:[#allocation4 + $0xb18] sm:$0xff] }
 0x186   :  { %2898 = vmatpush1.bf16.msra.mxu1 %v3936_v28  ;;  %2858 = vmatprep.subr.bf16.mxu0 %v3801_v7  ;;  %v432_v6 = vld [vmem:[#allocation4 + $0xb38] sm:$0xff]  ;;  %v3880_v28 = vcombine.low %v308_v16, %v312_v61  ;;  %v4008_v7 = vcombine.low %v436_v62, %v440_v63  ;;  %v474_v16 = vrot.slane %v4437_v55, %v473_v51  ;;  %v4240_v51 = vld [vmem:[%s4679_s3 + $0x1b8] sm:$0xff]  }
 0x187   :  { %2899 = vmatprep.subr.bf16.mxu1 %v3929_v8  ;;  %v3873_v8 = vcombine.high %v300_v4, %v304_v5  ;;  %v4001_v9 = vcombine.high %v428_v59, %v432_v6  ;;  %v412_v24 = vld [vmem:[#allocation4 + $0xa98] sm:$0xff] }
 0x188   :  { %v276_v30 = vld [vmem:[#allocation4 + $0x658] sm:$0xff] }
 0x189   :  { %2859 = vmatpush1.bf16.msra.mxu0 %v3800_v13  ;;  %v424_v13 = vld [vmem:[#allocation4 + $0xaf8] sm:$0xff] }
 0x18a   :  { %2900 = vmatpush1.bf16.msra.mxu1 %v3928_v14  ;;  %2860 = vmatprep.subr.bf16.mxu0 %v3793_v15  ;;  %v3872_v14 = vcombine.low %v300_v4, %v304_v5  ;;  %v4000_v15 = vcombine.low %v428_v59, %v432_v6  ;;  %v3993_v18 = vcombine.high %v420_v12, %v424_v13  ;;  %v280_v31 = vld [vmem:[#allocation4 + $0x678] sm:$0xff] }
 0x18b   :  { %2901 = vmatprep.subr.bf16.mxu1 %v3921_v17  ;;  %v3865_v17 = vcombine.high %v292_v10, %v296_v11  ;;  %v404_v33 = vld [vmem:[#allocation4 + $0xa58] sm:$0xff] }
 0x18c   :  { %v268_v39 = vld [vmem:[#allocation4 + $0x618] sm:$0xff] }
 0x18d   :  { %2861 = vmatpush1.bf16.msra.mxu0 %v3792_v25  ;;  %v416_v25 = vld [vmem:[#allocation4 + $0xab8] sm:$0xff] }
 0x18e   :  { %2902 = vmatpush1.bf16.msra.mxu1 %v3920_v26  ;;  %2862 = vmatprep.subr.bf16.mxu0 %v3785_v53  ;;  %v3864_v26 = vcombine.low %v292_v10, %v296_v11  ;;  %v3992_v53 = vcombine.low %v420_v12, %v424_v13  ;;  %v3985_v54 = vcombine.high %v412_v24, %v416_v25  ;;  %v272_v40 = vld [vmem:[#allocation4 + $0x638] sm:$0xff]  ;;  %v4202_v10 = vld [vmem:[%s4679_s3 + $0xa8] sm:$0xff]   ;;  %v4203_v11 = vld [vmem:[%s4679_s3 + $0x60] sm:$0xff]  }
 0x18f   :  { %2903 = vmatprep.subr.bf16.mxu1 %v3913_v27  ;;  %v3857_v27 = vcombine.high %v284_v22, %v288_v23  ;;  %v396_v41 = vld [vmem:[#allocation4 + $0xa18] sm:$0xff]  ;;  %v3840_v52 = vcombine.low %v268_v39, %v272_v40 }
 0x190   :  { %v4195_v61 = vld [vmem:[%s4679_s3 + $0x70] sm:$0xff]  }
 0x191   :  { %2863 = vmatpush1.bf16.msra.mxu0 %v3784_v34  ;;  %v408_v34 = vld [vmem:[#allocation4 + $0xa78] sm:$0xff] }
 0x192   :  { %2904 = vmatpush1.bf16.msra.mxu1 %v3912_v35  ;;  %2864 = vmatprep.subr.bf16.mxu0 %v3777_v36  ;;  %v3856_v35 = vcombine.low %v284_v22, %v288_v23  ;;  %v3984_v36 = vcombine.low %v412_v24, %v416_v25  ;;  %v3977_v38 = vcombine.high %v404_v33, %v408_v34  ;;  %v4196_v62 = vld [vmem:[%s4679_s3 + $0xf0] sm:$0xff]   ;;  %v4206_v22 = vld [vmem:[%s4679_s3 + $0xa0] sm:$0xff]   ;;  %v4207_v23 = vld [vmem:[%s4679_s3 + $0x58] sm:$0xff]  }
 0x193   :  { %2905 = vmatprep.subr.bf16.mxu1 %v3905_v37  ;;  %v3849_v37 = vcombine.high %v276_v30, %v280_v31  ;;  %v4198_v5 = vld [vmem:[%s4679_s3 + $0xb0] sm:$0xff]   ;;  %v4208_v24 = vld [vmem:[%s4679_s3 + $0xd8] sm:$0xff]  }
 0x195   :  { %2865 = vmatpush1.bf16.msra.mxu0 %v3776_v19  ;;  %v400_v19 = vld [vmem:[#allocation4 + $0xa38] sm:$0xff] }
 0x196   :  { %2906 = vmatpush1.bf16.msra.mxu1 %v3904_v58  ;;  %2866 = vmatprep.subr.bf16.mxu0 %v3897_v43  ;;  %v3848_v58 = vcombine.low %v276_v30, %v280_v31  ;;  %v3976_v43 = vcombine.low %v404_v33, %v408_v34  ;;  %v3969_v48 = vcombine.high %v396_v41, %v400_v19  ;;  %v4213_v30 = vld [vmem:[%s4679_s3 + $0x10] sm:$0xff]   ;;  %v4215_v33 = vld [vmem:[%s4679_s3 + $0x48] sm:$0xff]  }
 0x197   :  { %2907 = vmatprep.subr.bf16.mxu1 %v4025_v46  ;;  %v3841_v46 = vcombine.high %v268_v39, %v272_v40  ;;  %v4214_v31 = vld [vmem:[%s4679_s3 + $0x90] sm:$0xff]   ;;  %v4220_v39 = vld [vmem:[%s4679_s3 + $0xc0] sm:$0xff]  }
 0x198   :  { %v4221_v40 = vld [vmem:[%s4679_s3] sm:$0xff]  }
 0x199   :  { %2867 = vmatpush2.bf16.msra.mxu0 %v3896_v56  ;;  %v3968_v56 = vcombine.low %v396_v41, %v400_v19  ;;  %v2932_v41 = vmax.f32 %v4452_v44, 0.0  ;;  %v4222_v19 = vld [vmem:[%s4679_s3 + $0x80] sm:$0xff]   ;;  %v4224_v44 = vld [vmem:[%s4679_s3 + $0x138] sm:$0xff]  }
 0x19a   :  { %2908 = vmatpush2.bf16.msra.mxu1 %v4024_v21  ;;  %2868 = vmatprep.subr.bf16.mxu0 %v3889_v57  ;;  %v4191_v21 = vld [vmem:[%s4679_s3 + $0x78] sm:$0xff]  }
 0x19b   :  { %2909 = vmatprep.subr.bf16.mxu1 %v4017_v60  ;;  %v4192_v57 = vld [vmem:[%s4679_s3 + $0xf8] sm:$0xff]   ;;  %v2933_v60 = vmax.f32 %v2559_v49, 0.0  ;;  %v4225_v49 = vld [vmem:[%s4679_s3 + $0x170] sm:$0xff]  }
 0x19d   :  { %2869 = vmatpush2.bf16.msra.mxu0 %v3888_v0  ;;  %v2941_v63 = vpack.c.bf16 %v2933_v60, %v2933_v60  ;;  %v4242_v60 = vld [vmem:[%s4679_s3 + $0x1b0] sm:$0xff]  }
 0x19e   :  { %2910 = vmatpush2.bf16.msra.mxu1 %v4016_v1  ;;  %2870 = vmatprep.subr.bf16.mxu0 %v3881_v2  ;;  %v2600_v1 = vadd.f32 %v4459_v50, %v474_v16  ;;  %v4243_v16 = vld [vmem:[%s4679_s3 + $0x1e8] sm:$0xff]  }
 0x19f   :  { %2911 = vmatprep.subr.bf16.mxu1 %v4009_v3  ;;  %v4197_v3 = vld [vmem:[%s4679_s3 + $0x30] sm:$0xff]  }
 0x1a1   :  { %2871 = vmatpush2.bf16.msra.mxu0 %v3880_v28 }
 0x1a2   :  { %2912 = vmatpush2.bf16.msra.mxu1 %v4008_v7  ;;  %2872 = vmatprep.subr.bf16.mxu0 %v3873_v8  ;;  %v4201_v8 = vld [vmem:[%s4679_s3 + $0x28] sm:$0xff]  }
 0x1a3   :  { %2913 = vmatprep.subr.bf16.mxu1 %v4001_v9 }
 0x1a5   :  { %2873 = vmatpush2.bf16.msra.mxu0 %v3872_v14  ;;  %v4204_v14 = vld [vmem:[%s4679_s3 + $0xe0] sm:$0xff]  }
 0x1a6   :  { %2914 = vmatpush2.bf16.msra.mxu1 %v4000_v15  ;;  %2874 = vmatprep.subr.bf16.mxu0 %v3865_v17  ;;  %v469_v15 = vsub.s32 2, %v4434_v42 }
 0x1a7   :  { %2915 = vmatprep.subr.bf16.mxu1 %v3993_v18  ;;  %v4205_v18 = vld [vmem:[%s4679_s3 + $0x20] sm:$0xff]  }
 0x1a8   :  { %v470_v25 = vrot.slane %v4437_v55, %v469_v15  ;;  %v4212_v55 = vld [vmem:[%s4679_s3 + $0xd0] sm:$0xff]  }
 0x1a9   :  { %2875 = vmatpush2.bf16.msra.mxu0 %v3864_v26  ;;  %v4209_v26 = vld [vmem:[%s4679_s3 + $0x18] sm:$0xff]  }
 0x1aa   :  { %2916 = vmatpush2.bf16.msra.mxu1 %v3992_v53  ;;  %2876 = vmatprep.subr.bf16.mxu0 %v3857_v27  ;;  %v4210_v53 = vld [vmem:[%s4679_s3 + $0x98] sm:$0xff]   ;;  %v4211_v27 = vld [vmem:[%s4679_s3 + $0x50] sm:$0xff]  }
 0x1ab   :  { %2917 = vmatprep.subr.bf16.mxu1 %v3985_v54  ;;  %v2598_v54 = vadd.f32 %v4454_v45, %v470_v25  ;;  %v4216_v45 = vld [vmem:[%s4679_s3 + $0xc8] sm:$0xff]   ;;  %v481_v25 = vsub.s32 5, %v4434_v42 }
 0x1ad   :  { %2877 = vmatpush2.bf16.msra.mxu0 %v3856_v35  ;;  %v4217_v35 = vld [vmem:[%s4679_s3 + $0x8] sm:$0xff]  }
 0x1ae   :  { %2918 = vmatpush2.bf16.msra.mxu1 %v3984_v36  ;;  %2878 = vmatprep.subr.bf16.mxu0 %v3849_v37  ;;  %v4218_v36 = vld [vmem:[%s4679_s3 + $0x88] sm:$0xff]   ;;  %v4219_v37 = vld [vmem:[%s4679_s3 + $0x40] sm:$0xff]  }
 0x1af   :  { %2919 = vmatprep.subr.bf16.mxu1 %v3977_v38 }
 0x1b1   :  { %2879 = vmatpush2.bf16.msra.mxu0 %v3848_v58  ;;  %v4223_v58 = vld [vmem:[%s4679_s3 + $0x178] sm:$0xff]  }
 0x1b2   :  { %2920 = vmatpush2.bf16.msra.mxu1 %v3976_v43  ;;  %2880 = vmatprep.subr.bf16.mxu0 %v3841_v46  ;;  %v4239_v46 = vld [vmem:[%s4679_s3 + $0x1f8] sm:$0xff]  }
 0x1b3   :  { %2921 = vmatprep.subr.bf16.mxu1 %v3969_v48  ;;  %v2940_v48 = vpack.c.bf16 %v2932_v41, %v2932_v41 }
 0x1b5   :  { %2881 = vmatpush2.bf16.msra.mxu0 %v3840_v52 }
 0x1b6   :  { %2922 = vmatpush2.bf16.msra.mxu1 %v3968_v56  ;;  %4091 = vmatprep.subr.bf16.mxu0 %v4191_v21  ;;  %v4241_v56 = vld [vmem:[%s4679_s3 + $0x1f0] sm:$0xff]  }
 0x1b7   :  { %4113 = vmatprep.subr.bf16.mxu1 %v4192_v57  ;;  %v4226_v21 = vld [vmem:[%s4679_s3 + $0x130] sm:$0xff]   ;;  %v4227_v57 = vld [vmem:[%s4679_s3 + $0x168] sm:$0xff]  }
 0x1b8   :  { %v2638_v0 = vpop.f32.mrf.mxu0  ;;  %2883 = vmatmul.mubr.bf16.vlgmr.msra.gmra.mxu0 %v4412_v20  ;;  %v4199_v20 = vld [vmem:[%s4679_s3 + $0x68] sm:$0xff]  }
 0x1b9   :  { %v4487_v2 = vpop.f32.mrf.mxu1  ;;  %2924 = vmatmul.mubr.bf16.vlgmr.msra.gmra.mxu1 %v4424_v32  ;;  %4092 = vmatpush3.bf16.msra.mxu0 %v4193_v29  ;;  %v4200_v32 = vld [vmem:[%s4679_s3 + $0xe8] sm:$0xff]   ;;  %v2639_v34 = vadd.f32 %v2638_v0, %v2598_v54  ;;  %v4231_v0 = vld [vmem:[%s4679_s3 + $0x158] sm:$0xff]  }
 0x1ba   :  { %3499 = vmatprep.mubr.bf16.mxu0 %v2941_v63  ;;  %4114 = vmatpush3.bf16.msra.mxu1 %v4194_v47  ;;  %v2640_v4 = vpop.f32.mrf.mxu0  ;;  %v4228_v29 = vld [vmem:[%s4679_s3 + $0x128] sm:$0xff]   ;;  %v4229_v47 = vld [vmem:[%s4679_s3 + $0x160] sm:$0xff]  }
 0x1bb   :  { %v2641_v50 = vadd.f32 %v2640_v4, %v2600_v1  ;;  %v2681_v59 = vpop.f32.mrf.mxu1  ;;  %4093 = vmatprep.subr.bf16.mxu0 %v4195_v61  ;;  %4115 = vmatprep.subr.bf16.mxu1 %v4196_v62  ;;  %v2680_v38 = vadd.f32 %v4487_v2, %v2639_v34  ;;  %v4244_v61 = vld [vmem:[%s4679_s3 + $0x1a8] sm:$0xff]   ;;  %v4245_v62 = vld [vmem:[%s4679_s3 + $0x1e0] sm:$0xff]   ;;  %v4247_v2 = vld [vmem:[%s4679_s3 + $0x1d8] sm:$0xff]  }
 0x1bc   :  { %v2642_v6 = vpop.f32.mrf.mxu0  ;;  %v4230_v63 = vld [vmem:[%s4679_s3 + $0x120] sm:$0xff]   ;;  %v4233_v4 = vld [vmem:[%s4679_s3 + $0x150] sm:$0xff]  }
 0x1bd   :  { %v2682_v28 = vadd.f32 %v2681_v59, %v2641_v50  ;;  %v2683_v7 = vpop.f32.mrf.mxu1  ;;  %4094 = vmatpush3.bf16.msra.mxu0 %v4197_v3  ;;  %v2934_v43 = vmax.f32 %v2680_v38, 0.0  ;;  %v4246_v1 = vld [vmem:[%s4679_s3 + $0x1a0] sm:$0xff]   ;;  %v4232_v3 = vld [vmem:[%s4679_s3 + $0x118] sm:$0xff]   ;;  %v4235_v50 = vld [vmem:[%s4679_s3 + $0x148] sm:$0xff]  }
 0x1be   :  { %4116 = vmatpush3.bf16.msra.mxu1 %v4198_v5  ;;  %v2643_v9 = vpop.f32.mrf.mxu0  ;;  %4095 = vmatprep.subr.bf16.mxu0 %v4199_v20  ;;  %v4248_v5 = vld [vmem:[%s4679_s3 + $0x198] sm:$0xff]   ;;  %v4234_v20 = vld [vmem:[%s4679_s3 + $0x110] sm:$0xff]   ;;  %v4236_v59 = vld [vmem:[%s4679_s3 + $0x108] sm:$0xff]  }
 0x1bf   :  { %v2935_v12 = vmax.f32 %v2682_v28, 0.0  ;;  %v2684_v13 = vpop.f32.mrf.mxu1  ;;  %4117 = vmatprep.subr.bf16.mxu1 %v4200_v32  ;;  %v2942_v52 = vpack.c.bf16 %v2934_v43, %v2934_v43  ;;  %v4237_v32 = vld [vmem:[%s4679_s3 + $0x140] sm:$0xff]   ;;  %v4249_v28 = vld [vmem:[%s4679_s3 + $0x1d0] sm:$0xff]  }
 0x1c0   :  { %v4238_v6 = vld [vmem:[%s4679_s3 + $0x100] sm:$0xff]  }
 0x1c1   :  { %v2943_v17 = vpack.c.bf16 %v2935_v12, %v2935_v12  ;;  %4096 = vmatpush3.bf16.msra.mxu0 %v4201_v8  ;;  %v4250_v8 = vld [vmem:[%s4679_s3 + $0x190] sm:$0xff]   ;;  %v4251_v12 = vld [vmem:[%s4679_s3 + $0x1c8] sm:$0xff]  }
 0x1c2   :  { %4118 = vmatpush3.bf16.msra.mxu1 %v4202_v10  ;;  %4097 = vmatprep.subr.bf16.mxu0 %v4203_v11 }
 0x1c3   :  { %3539 = vmatprep.mubr.bf16.mxu1 %v2943_v17  ;;  %4119 = vmatprep.subr.bf16.mxu1 %v4204_v14  ;;  %v4252_v14 = vld [vmem:[%s4679_s3 + $0x188] sm:$0xff]  }
 0x1c5   :  { %4098 = vmatpush3.bf16.msra.mxu0 %v4205_v18 }
 0x1c6   :  { %4120 = vmatpush3.bf16.msra.mxu1 %v4206_v22  ;;  %4099 = vmatprep.subr.bf16.mxu0 %v4207_v23  ;;  %v4253_v22 = vld [vmem:[%s4679_s3 + $0x1c0] sm:$0xff]  }
 0x1c7   :  { %4121 = vmatprep.subr.bf16.mxu1 %v4208_v24  ;;  %v4254_v23 = vld [vmem:[%s4679_s3 + $0x180] sm:$0xff]   ;;  %v477_v24 = vsub.s32 4, %v4434_v42 }
 0x1c9   :  { %4100 = vmatpush3.bf16.msra.mxu0 %v4209_v26  ;;  %v4255_v26 = vld [vmem:[#allocation6] sm:$0xff] }
 0x1ca   :  { %4122 = vmatpush3.bf16.msra.mxu1 %v4210_v53  ;;  %4101 = vmatprep.subr.bf16.mxu0 %v4211_v27  ;;  %v478_v53 = vrot.slane %v4255_v26, %v477_v24  ;;  %v482_v27 = vrot.slane %v4255_v26, %v481_v25 }
 0x1cb   :  { %4123 = vmatprep.subr.bf16.mxu1 %v4212_v55 }
 0x1cd   :  { %4102 = vmatpush3.bf16.msra.mxu0 %v4213_v30 }
 0x1ce   :  { %4124 = vmatpush3.bf16.msra.mxu1 %v4214_v31  ;;  %4103 = vmatprep.subr.bf16.mxu0 %v4215_v33 }
 0x1cf   :  { %4125 = vmatprep.subr.bf16.mxu1 %v4216_v45 }
 0x1d1   :  { %4104 = vmatpush3.bf16.msra.mxu0 %v4217_v35 }
 0x1d2   :  { %4126 = vmatpush3.bf16.msra.mxu1 %v4218_v36  ;;  %4105 = vmatprep.subr.bf16.mxu0 %v4219_v37 }
 0x1d3   :  { %4127 = vmatprep.subr.bf16.mxu1 %v4220_v39 }
 0x1d5   :  { %4106 = vmatpush3.bf16.msra.mxu0 %v4221_v40 }
 0x1d6   :  { %4128 = vmatpush3.bf16.msra.mxu1 %v4222_v19  ;;  %4135 = vmatprep.subr.bf16.mxu0 %v4223_v58 }
 0x1d7   :  { %4157 = vmatprep.subr.bf16.mxu1 %v4239_v46 }
 0x1d8   :  { %3500 = vmatmul.mubr.bf16.vlgmr.msra.gmra.mxu0 %v2940_v48  ;;  %v489_v48 = vsub.s32 7, %v4434_v42 }
 0x1d9   :  { %3540 = vmatmul.mubr.bf16.vlgmr.msra.gmra.mxu1 %v2942_v52  ;;  %4136 = vmatpush3.bf16.msra.mxu0 %v4224_v44  ;;  %v485_v44 = vsub.s32 6, %v4434_v42 }
 0x1da   :  { %4137 = vmatprep.subr.bf16.mxu0 %v4225_v49  ;;  %4158 = vmatpush3.bf16.msra.mxu1 %v4240_v51  ;;  %v490_v51 = vrot.slane %v4255_v26, %v489_v48 }
 0x1db   :  { %4159 = vmatprep.subr.bf16.mxu1 %v4241_v56  ;;  %v486_v49 = vrot.slane %v4255_v26, %v485_v44 }
 0x1dd   :  { %4138 = vmatpush3.bf16.msra.mxu0 %v4226_v21 }
 0x1de   :  { %4139 = vmatprep.subr.bf16.mxu0 %v4227_v57  ;;  %4160 = vmatpush3.bf16.msra.mxu1 %v4242_v60 }
 0x1df   :  { %4161 = vmatprep.subr.bf16.mxu1 %v4243_v16 }
 0x1e1   :  { %4140 = vmatpush3.bf16.msra.mxu0 %v4228_v29 }
 0x1e2   :  { %4141 = vmatprep.subr.bf16.mxu0 %v4229_v47  ;;  %4162 = vmatpush3.bf16.msra.mxu1 %v4244_v61 }
 0x1e3   :  { %4163 = vmatprep.subr.bf16.mxu1 %v4245_v62 }
 0x1e5   :  { %4142 = vmatpush3.bf16.msra.mxu0 %v4230_v63 }
 0x1e6   :  { %4143 = vmatprep.subr.bf16.mxu0 %v4231_v0  ;;  %4164 = vmatpush3.bf16.msra.mxu1 %v4246_v1 }
 0x1e7   :  { %4165 = vmatprep.subr.bf16.mxu1 %v4247_v2 }
 0x1e9   :  { %4144 = vmatpush3.bf16.msra.mxu0 %v4232_v3 }
 0x1ea   :  { %4145 = vmatprep.subr.bf16.mxu0 %v4233_v4  ;;  %4166 = vmatpush3.bf16.msra.mxu1 %v4248_v5 }
 0x1eb   :  { %4167 = vmatprep.subr.bf16.mxu1 %v4249_v28 }
 0x1ed   :  { %4146 = vmatpush3.bf16.msra.mxu0 %v4234_v20 }
 0x1ee   :  { %4147 = vmatprep.subr.bf16.mxu0 %v4235_v50  ;;  %4168 = vmatpush3.bf16.msra.mxu1 %v4250_v8 }
 0x1ef   :  { %4169 = vmatprep.subr.bf16.mxu1 %v4251_v12 }
 0x1f1   :  { %4148 = vmatpush3.bf16.msra.mxu0 %v4236_v59  ;;  %v4026_v59 = vld [vmem:[#allocation7] ss:$0 sm:$0xff] }
 0x1f2   :  { %4149 = vmatprep.subr.bf16.mxu0 %v4237_v32  ;;  %4170 = vmatpush3.bf16.msra.mxu1 %v4252_v14 }
 0x1f3   :  { %4171 = vmatprep.subr.bf16.mxu1 %v4253_v22 }
 0x1f5   :  { %4150 = vmatpush3.bf16.msra.mxu0 %v4238_v6 }
 0x1f6   :  { %4172 = vmatpush3.bf16.msra.mxu1 %v4254_v23 }
 0x1f8   :  { %v2720_v7 = vpop.f32.mrf.mxu0 }
 0x1f9   :  { %v2761_v9 = vpop.f32.mrf.mxu1  ;;  %v2721_v55 = vadd.f32 %v2720_v7, %v478_v53 }
 0x1fa   :  { %v2722_v10 = vpop.f32.mrf.mxu0 }
 0x1fb   :  { %v2763_v11 = vpop.f32.mrf.mxu1  ;;  %v2723_v54 = vadd.f32 %v2722_v10, %v482_v27  ;;  %v2762_v30 = vadd.f32 %v2761_v9, %v2721_v55 }
 0x1fc   :  { %v2724_v13 = vpop.f32.mrf.mxu0 }
 0x1fd   :  { %v2765_v15 = vpop.f32.mrf.mxu1  ;;  %v2764_v33 = vadd.f32 %v2763_v11, %v2723_v54 }
 0x1fe   :  { %v2725_v17 = vpop.f32.mrf.mxu0 }
 0x1ff   :  { %v2766_v18 = vpop.f32.mrf.mxu1 }
 0x238   :  { %v2802_v31 = vpop.f32.mrf.mxu0 }
 0x239   :  { %v2803_v34 = vadd.f32 %v2802_v31, %v2762_v30  ;;  %v2843_v45 = vpop.f32.mrf.mxu1 }
 0x23a   :  { %v2804_v35 = vpop.f32.mrf.mxu0  ;;  %v2844_v52 = vadd.f32 %v2843_v45, %v486_v49 }
 0x23b   :  { %v2805_v36 = vadd.f32 %v2804_v35, %v2764_v33  ;;  %v2845_v37 = vpop.f32.mrf.mxu1  ;;  %v2936_v38 = vmax.f32 %v2803_v34, 0.0 }
 0x23c   :  { %v2806_v39 = vpop.f32.mrf.mxu0  ;;  %v2846_v21 = vadd.f32 %v2845_v37, %v490_v51 }
 0x23d   :  { %v2937_v40 = vmax.f32 %v2805_v36, 0.0  ;;  %v2847_v41 = vpop.f32.mrf.mxu1  ;;  %v2944_v46 = vpack.c.bf16 %v2936_v38, %v2936_v38 }
 0x23e   :  { %v2807_v19 = vpop.f32.mrf.mxu0 }
 0x23f   :  { %v2945_v58 = vpack.c.bf16 %v2937_v40, %v2937_v40  ;;  %v2848_v43 = vpop.f32.mrf.mxu1 }
 0x241   :  { %3579 = vmatprep.mubr.bf16.mxu0 %v2945_v58 }
 0x242   :  { %3580 = vmatmul.mubr.bf16.vlgmr.msra.gmra.mxu0 %v2944_v46 }
 0x278   :  { %v2884_v56 = vpop.f32.mrf.mxu0 }
 0x279   :  { %v2885_v57 = vadd.f32 %v2884_v56, %v2844_v52  ;;  %v2925_v60 = vpop.f32.mrf.mxu1 }
 0x27a   :  { %v2886_v16 = vpop.f32.mrf.mxu0 }
 0x27b   :  { %v2926_v29 = vadd.f32 %v2925_v60, %v2885_v57  ;;  %v2887_v47 = vadd.f32 %v2886_v16, %v2846_v21  ;;  %v2927_v61 = vpop.f32.mrf.mxu1 }
 0x27c   :  { %v2888_v62 = vpop.f32.mrf.mxu0 }
 0x27d   :  { %v2928_v63 = vadd.f32 %v2927_v61, %v2887_v47  ;;  %v2929_v0 = vpop.f32.mrf.mxu1  ;;  %v2938_v1 = vmax.f32 %v2926_v29, 0.0 }
 0x27e   :  { %v2889_v2 = vpop.f32.mrf.mxu0 }
 0x27f   :  { %v2939_v3 = vmax.f32 %v2928_v63, 0.0  ;;  %v2930_v4 = vpop.f32.mrf.mxu1  ;;  %v2946_v42 = vpack.c.bf16 %v2938_v1, %v2938_v1 }
 0x281   :  { %v2947_v5 = vpack.c.bf16 %v2939_v3, %v2939_v3 }
 0x283   :  { %3619 = vmatprep.mubr.bf16.mxu1 %v2947_v5 }
 0x284   :  { %3620 = vmatmul.mubr.bf16.vlgmr.msra.gmra.mxu1 %v2946_v42 }
 0x298   :  { %v4107_v20 = vpop.f32.mrf.mxu0 }
 0x299   :  { %v4129_v50 = vpop.f32.mrf.mxu1 }
 0x29a   :  { %v4108_v32 = vpop.f32.mrf.mxu0 }
 0x29b   :  { %v4109_v6 = vadd.f32 %v4108_v32, %v4107_v20  ;;  %v4130_v28 = vpop.f32.mrf.mxu1 }
 0x29c   :  { %v4131_v7 = vadd.f32 %v4130_v28, %v4129_v50  ;;  %v4110_v8 = vpop.f32.mrf.mxu0 }
 0x29d   :  { %v3502_v9 = vadd.f32 %v4109_v6, %v4026_v59  ;;  %v4132_v10 = vpop.f32.mrf.mxu1 }
 0x29e   :  { %v4111_v11 = vpop.f32.mrf.mxu0 }
 0x29f   :  { %v3542_v12 = vadd.f32 %v4131_v7, %v3502_v9  ;;  %v4133_v13 = vpop.f32.mrf.mxu1 }
 0x302   :  { %v4151_v14 = vpop.f32.mrf.mxu0 }
 0x304   :  { %v4152_v15 = vpop.f32.mrf.mxu0 }
 0x305   :  { %v4153_v17 = vadd.f32 %v4152_v15, %v4151_v14 }
 0x306   :  { %v4154_v18 = vpop.f32.mrf.mxu0 }
 0x307   :  { %v3582_v22 = vadd.f32 %v4153_v17, %v3542_v12 }
 0x308   :  { %v4155_v23 = vpop.f32.mrf.mxu0 }
 0x344   :  { %v4173_v24 = vpop.f32.mrf.mxu1 }
 0x346   :  { %v4174_v25 = vpop.f32.mrf.mxu1 }
 0x347   :  { %v4175_v26 = vadd.f32 %v4174_v25, %v4173_v24 }
 0x348   :  { %v4176_v53 = vpop.f32.mrf.mxu1 }
 0x349   :  { %v3622_v27 = vadd.f32 %v4175_v26, %v3582_v22 }
 0x34a   :  { %v4177_v55 = vpop.f32.mrf.mxu1 }
 0x34b   :  { %3628 = vst.msk [vmem:[%s4681_s5] sm:$0xff] %vm3627_vm0, %v3622_v27 }
 0x34c   :  { %3633 = vsyncpa [#allocation3], 1 }
 0x34d   :  { %3634 = vsyncpa [#allocation5], 1 }
 0x34e   :  { %3635 = vsyncpa [#allocation8], 1 }

</bundles_post_ra>
